<compile_context>
chip_gen: v7x
topology: tpu7x:2x2x1
jax: 0.10.0
libtpu: 0.0.40
codegen_flags: <defaults>
</compile_context>

<pallas_src>
import functools

import jax
import jax.numpy as jnp
from jax import lax
from jax.experimental import pallas as pl
from jax.experimental.pallas import tpu as pltpu


# ----------------------------------------------------------------------------
# Model dimensions (small, consistent with the module's forward)
# ----------------------------------------------------------------------------
B = 2           # batch
L = 16          # sequence length
D = 32          # d_model
D_INNER = 64    # d_inner
N_LAYER = 2     # n_layer
N_CLASSES = 10  # num_classes
LN_EPS = 1e-5
OUT_PAD = 128   # lane-dense logits store width


def _layernorm(x, gamma, beta, eps=LN_EPS):
    mean = jnp.mean(x, axis=-1, keepdims=True)
    xc = x - mean
    var = jnp.mean(xc * xc, axis=-1, keepdims=True)
    inv = lax.rsqrt(var + eps)
    return xc * inv * gamma + beta


# ----------------------------------------------------------------------------
# Fused single-step kernel: N_LAYER x [S4 block -> residual -> LN1 -> Mlp ->
# residual -> LN2] followed by mean-pool + classification MLP, whole batch
# row-stacked through every matmul.
# ----------------------------------------------------------------------------
def s4_classifier_fused_kernel(x_ref, wa_ref, wb_ref, kv_ref, bias_ref, o_ref,
                               *, n_layer, batch, seq_len, d_model, d_inner,
                               out_pad):
    bf16 = jnp.bfloat16
    f32 = jnp.float32
    x = x_ref[...]                                    # (B*L, D) f32
    zeros_l = jnp.zeros((seq_len, d_model), f32)

    for layer in range(n_layer):                      # static unroll (2)
        kv = kv_ref[layer]                            # (L+8, D) f32
        kt = kv[0:seq_len, :]                         # (L, D) conv kernel^T
        vec = kv[seq_len:seq_len + 8, :]              # (8, D) packed vectors
        d_skip, b_out = vec[0:1, :], vec[1:2, :]
        ln1_g, ln1_b = vec[2:3, :], vec[3:4, :]
        b2, ln2_g, ln2_b = vec[4:5, :], vec[5:6, :], vec[6:7, :]
        b1 = bias_ref[layer:layer + 1, :]             # (1, Di)

        row_a = layer * (d_model + d_inner)
        wout = wa_ref[row_a:row_a + d_model, :]                       # (D, D)  bf16
        w2 = wa_ref[row_a + d_model:row_a + d_model + d_inner, :]     # (Di, D) bf16
        w1 = wb_ref[layer * d_model:(layer + 1) * d_model, :]         # (D, Di) bf16

        # --- S4 block: depthwise causal conv, per-batch, all in vregs ---
        # y[l, d] = sum_{j<=l} K[d, j] * x[l-j, d]
        y_parts = []
        for b in range(batch):                        # static B loop
            xb = x[b * seq_len:(b + 1) * seq_len, :]  # (L, D)
            padb = jnp.concatenate([zeros_l, xb], axis=0)   # (2L, D) value
            yb = xb * kt[0:1, :]                      # j = 0 term
            j = 1
            while j + 1 < seq_len:                    # paired lag terms
                yb = yb + (padb[seq_len - j:2 * seq_len - j, :] * kt[j:j + 1, :]
                           + padb[seq_len - j - 1:2 * seq_len - j - 1, :]
                           * kt[j + 1:j + 2, :])
                j += 2
            if j < seq_len:
                yb = yb + padb[seq_len - j:2 * seq_len - j, :] * kt[j:j + 1, :]
            y_parts.append(yb)
        y = jnp.concatenate(y_parts, axis=0)          # (B*L, D)

        y = y + x * d_skip                            # per-channel skip
        y = jax.nn.gelu(y, approximate=True)
        y = jnp.dot(y.astype(bf16), wout, preferred_element_type=f32) + b_out

        # --- residual + LayerNorm1 (post-norm path) ---
        h = _layernorm(x + y, ln1_g, ln1_b)

        # --- Mlp (ReLU) + residual + LayerNorm2 ---
        ff = jnp.dot(h.astype(bf16), w1, preferred_element_type=f32) + b1
        ff = jnp.maximum(ff, 0.0)
        ff = jnp.dot(ff.astype(bf16), w2, preferred_element_type=f32) + b2
        x = _layernorm(h + ff, ln2_g, ln2_b)

    # --- classification head: MEAN pooling over sequence + 2-layer MLP ---
    pooled = jnp.concatenate(
        [jnp.mean(x[b * seq_len:(b + 1) * seq_len, :], axis=0, keepdims=True)
         for b in range(batch)], axis=0)              # (B, D)

    hrow = n_layer * d_model
    hw1 = wb_ref[hrow:hrow + d_model, :]                            # (D, Di)  bf16
    hw2 = wb_ref[hrow + d_model:hrow + d_model + d_inner, :]        # (Di, Di) bf16
    hb1 = bias_ref[n_layer:n_layer + 1, :]                          # (1, Di)
    hb2 = bias_ref[n_layer + 1:n_layer + 2, :]                      # (1, Di)

    hh = jnp.dot(pooled.astype(bf16), hw1, preferred_element_type=f32) + hb1
    hh = jnp.maximum(hh, 0.0)
    logits = jnp.dot(hh.astype(bf16), hw2, preferred_element_type=f32) + hb2  # (B, Di)

    # Lane-dense store: pad logits up to 128 lanes; wrapper slices [:, :C].
    if out_pad > d_inner:
        logits = jnp.concatenate(
            [logits, jnp.zeros((batch, out_pad - d_inner), f32)], axis=-1)
    o_ref[...] = logits                               # (B, out_pad)


@jax.jit
def s4_classifier_forward(src, params):
    """src: (B, L, D) float32 -> logits (B, num_classes) float32."""
    Bn, Ln, Dn = src.shape
    kv = params["kv"]
    n_layer = kv.shape[0]
    Di = params["wb"].shape[1]
    x2d = src.reshape(Bn * Ln, Dn)                    # row-stack the batch

    out = pl.pallas_call(
        functools.partial(s4_classifier_fused_kernel,
                          n_layer=n_layer, batch=Bn, seq_len=Ln, d_model=Dn,
                          d_inner=Di, out_pad=OUT_PAD),
        out_shape=jax.ShapeDtypeStruct((Bn, OUT_PAD), jnp.float32),
        grid=(1,),                                    # single fused step
        in_specs=[
            pl.BlockSpec((Bn * Ln, Dn), lambda i: (0, 0)),        # activations
            pl.BlockSpec(params["wa"].shape, lambda i: (0, 0)),   # bf16 pack (D cols)
            pl.BlockSpec(params["wb"].shape, lambda i: (0, 0)),   # bf16 pack (Di cols)
            pl.BlockSpec(kv.shape, lambda i: (0, 0, 0)),          # f32 conv+vec pack
            pl.BlockSpec(params["bias"].shape, lambda i: (0, 0)), # f32 bias pack
        ],
        out_specs=pl.BlockSpec((Bn, OUT_PAD), lambda i: (0, 0)),
        compiler_params=pltpu.CompilerParams(
            dimension_semantics=("arbitrary",)),
    )(x2d, params["wa"], params["wb"], kv, params["bias"])
    return out[:, :N_CLASSES]


# ----------------------------------------------------------------------------
# Parameter init (deterministic, synthetic) producing the 4 packed buffers
# ----------------------------------------------------------------------------
def init_params(key, d_model, d_inner, seq_len, n_layer, num_classes):
    f32, bf16 = jnp.float32, jnp.bfloat16
    keys = jax.random.split(key, n_layer * 5 + 2)

    pack_a_rows, pack_b_rows, kv_l, bias_rows = [], [], [], []
    for i in range(n_layer):
        k0, k1, k2, k3, k4 = keys[i * 5:(i + 1) * 5]
        kt = jax.random.normal(k0, (seq_len, d_model), f32) / seq_len
        d_skip = jax.random.normal(k1, (1, d_model), f32) * 0.1
        wout = jax.random.normal(k2, (d_model, d_model), f32) / jnp.sqrt(d_model)
        w1 = jax.random.normal(k3, (d_model, d_inner), f32) / jnp.sqrt(d_model)
        w2 = jax.random.normal(k4, (d_inner, d_model), f32) / jnp.sqrt(d_inner)
        b_out = jnp.zeros((1, d_model), f32)
        ln1_g = jnp.ones((1, d_model), f32)
        ln1_b = jnp.zeros((1, d_model), f32)
        b2 = jnp.zeros((1, d_model), f32)
        ln2_g = jnp.ones((1, d_model), f32)
        ln2_b = jnp.zeros((1, d_model), f32)

        # f32 pack per layer: [kt (L rows); d_skip; b_out; ln1_g; ln1_b; b2;
        #                      ln2_g; ln2_b; pad]  -> (L+8, D)
        kv_l.append(jnp.concatenate(
            [kt, d_skip, b_out, ln1_g, ln1_b, b2, ln2_g, ln2_b,
             jnp.zeros((1, d_model), f32)], axis=0))
        pack_a_rows += [wout, w2]          # D-wide columns
        pack_b_rows += [w1]                # Di-wide columns
        bias_rows.append(jnp.zeros((1, d_inner), f32))   # mlp b1

    kh1, kh2 = keys[n_layer * 5], keys[n_layer * 5 + 1]
    head_w1 = jax.random.normal(kh1, (d_model, d_inner), f32) / jnp.sqrt(d_model)
    head_w2 = jax.random.normal(kh2, (d_inner, num_classes), f32) / jnp.sqrt(d_inner)
    head_w2_pad = jnp.zeros((d_inner, d_inner), f32).at[:, :num_classes].set(head_w2)
    pack_b_rows += [head_w1, head_w2_pad]
    bias_rows.append(jnp.zeros((1, d_inner), f32))       # head b1
    bias_rows.append(jnp.zeros((1, d_inner), f32))       # head b2 (col-padded)

    return {
        "wa": jnp.concatenate(pack_a_rows, axis=0).astype(bf16),  # (n_layer*(D+Di), D)
        "wb": jnp.concatenate(pack_b_rows, axis=0).astype(bf16),  # (n_layer*D+D+Di, Di)
        "kv": jnp.stack(kv_l),                                    # (n_layer, L+8, D) f32
        "bias": jnp.concatenate(bias_rows, axis=0),               # (n_layer+2, Di)   f32
    }


if __name__ == "__main__":
    key = jax.random.PRNGKey(0)
    k_src, k_params = jax.random.split(key)
    src = jax.random.normal(k_src, (B, L, D), jnp.float32)  # (batch, seq, d_model)
    params = init_params(k_params, D, D_INNER, L, N_LAYER, N_CLASSES)

    logits = s4_classifier_forward(src, params)
    jax.block_until_ready(logits)
    assert logits.shape == (B, N_CLASSES) and logits.dtype == jnp.float32
    print("KERNEL_OK")
</pallas_src>

<mosaic_0001>
module attributes {stable_mosaic.version = 11 : i64} {
  func.func @s4_classifier_fused_kernel(%arg0: i32, %arg1: memref<32x32xf32, #tpu.memory_space<vmem>>, %arg2: memref<192x32xbf16, #tpu.memory_space<vmem>>, %arg3: memref<160x64xbf16, #tpu.memory_space<vmem>>, %arg4: memref<2x24x32xf32, #tpu.memory_space<vmem>>, %arg5: memref<4x64xf32, #tpu.memory_space<vmem>>, %arg6: memref<2x128xf32, #tpu.memory_space<vmem>>) attributes {dimension_semantics = [#tpu.dimension_semantics<arbitrary>], iteration_bounds = array<i64: 1>, scalar_prefetch = 0 : i64, scratch_operands = 0 : i64, tpu.core_type = #tpu.core_type<tc>, window_params = [{pipeline_mode = #tpu.pipeline_mode<synchronous>, transform_indices = @transform_0, window_bounds = array<i64: 32, 32>}, {pipeline_mode = #tpu.pipeline_mode<synchronous>, transform_indices = @transform_1, window_bounds = array<i64: 192, 32>}, {pipeline_mode = #tpu.pipeline_mode<synchronous>, transform_indices = @transform_2, window_bounds = array<i64: 160, 64>}, {pipeline_mode = #tpu.pipeline_mode<synchronous>, transform_indices = @transform_3, window_bounds = array<i64: 2, 24, 32>}, {pipeline_mode = #tpu.pipeline_mode<synchronous>, transform_indices = @transform_4, window_bounds = array<i64: 4, 64>}, {pipeline_mode = #tpu.pipeline_mode<synchronous>, transform_indices = @transform_5, window_bounds = array<i64: 2, 128>}]} {
    %c0 = arith.constant 0 : index
    %c0_0 = arith.constant 0 : index
    %0 = vector.load %arg1[%c0, %c0_0] : memref<32x32xf32, #tpu.memory_space<vmem>>, vector<32x32xf32>
    %cst = arith.constant 0.000000e+00 : f32
    %1 = vector.broadcast %cst : f32 to vector<16x32xf32>
    %c0_1 = arith.constant 0 : index
    %c0_2 = arith.constant 0 : index
    %c0_3 = arith.constant 0 : index
    %2 = vector.load %arg4[%c0_1, %c0_2, %c0_3] : memref<2x24x32xf32, #tpu.memory_space<vmem>>, vector<1x24x32xf32>
    %3 = vector.shape_cast %2 : vector<1x24x32xf32> to vector<24x32xf32>
    %4 = vector.extract_strided_slice %3 {offsets = [0, 0], sizes = [16, 32], strides = [1, 1]} : vector<24x32xf32> to vector<16x32xf32>
    %5 = vector.extract_strided_slice %3 {offsets = [16, 0], sizes = [8, 32], strides = [1, 1]} : vector<24x32xf32> to vector<8x32xf32>
    %6 = vector.extract_strided_slice %5 {offsets = [0, 0], sizes = [1, 32], strides = [1, 1]} : vector<8x32xf32> to vector<1x32xf32>
    %7 = vector.extract_strided_slice %5 {offsets = [1, 0], sizes = [1, 32], strides = [1, 1]} : vector<8x32xf32> to vector<1x32xf32>
    %8 = vector.extract_strided_slice %5 {offsets = [2, 0], sizes = [1, 32], strides = [1, 1]} : vector<8x32xf32> to vector<1x32xf32>
    %9 = vector.extract_strided_slice %5 {offsets = [3, 0], sizes = [1, 32], strides = [1, 1]} : vector<8x32xf32> to vector<1x32xf32>
    %10 = vector.extract_strided_slice %5 {offsets = [4, 0], sizes = [1, 32], strides = [1, 1]} : vector<8x32xf32> to vector<1x32xf32>
    %11 = vector.extract_strided_slice %5 {offsets = [5, 0], sizes = [1, 32], strides = [1, 1]} : vector<8x32xf32> to vector<1x32xf32>
    %12 = vector.extract_strided_slice %5 {offsets = [6, 0], sizes = [1, 32], strides = [1, 1]} : vector<8x32xf32> to vector<1x32xf32>
    %c0_4 = arith.constant 0 : index
    %c0_5 = arith.constant 0 : index
    %13 = vector.load %arg5[%c0_4, %c0_5] : memref<4x64xf32, #tpu.memory_space<vmem>>, vector<1x64xf32>
    %c0_6 = arith.constant 0 : index
    %c0_7 = arith.constant 0 : index
    %14 = vector.load %arg2[%c0_6, %c0_7] : memref<192x32xbf16, #tpu.memory_space<vmem>>, vector<32x32xbf16>
    %c32 = arith.constant 32 : index
    %c0_8 = arith.constant 0 : index
    %15 = vector.load %arg2[%c32, %c0_8] : memref<192x32xbf16, #tpu.memory_space<vmem>>, vector<64x32xbf16>
    %c0_9 = arith.constant 0 : index
    %c0_10 = arith.constant 0 : index
    %16 = vector.load %arg3[%c0_9, %c0_10] : memref<160x64xbf16, #tpu.memory_space<vmem>>, vector<32x64xbf16>
    %17 = vector.extract_strided_slice %0 {offsets = [0, 0], sizes = [16, 32], strides = [1, 1]} : vector<32x32xf32> to vector<16x32xf32>
    %18 = tpu.concatenate %1, %17 in 0 : vector<16x32xf32>, vector<16x32xf32> -> vector<32x32xf32>
    %19 = vector.extract_strided_slice %4 {offsets = [0, 0], sizes = [1, 32], strides = [1, 1]} : vector<16x32xf32> to vector<1x32xf32>
    %20 = vector.broadcast %19 : vector<1x32xf32> to vector<16x32xf32>
    %21 = arith.mulf %17, %20 : vector<16x32xf32>
    %22 = vector.extract_strided_slice %18 {offsets = [15, 0], sizes = [16, 32], strides = [1, 1]} : vector<32x32xf32> to vector<16x32xf32>
    %23 = vector.extract_strided_slice %4 {offsets = [1, 0], sizes = [1, 32], strides = [1, 1]} : vector<16x32xf32> to vector<1x32xf32>
    %24 = vector.broadcast %23 : vector<1x32xf32> to vector<16x32xf32>
    %25 = arith.mulf %22, %24 : vector<16x32xf32>
    %26 = vector.extract_strided_slice %18 {offsets = [14, 0], sizes = [16, 32], strides = [1, 1]} : vector<32x32xf32> to vector<16x32xf32>
    %27 = vector.extract_strided_slice %4 {offsets = [2, 0], sizes = [1, 32], strides = [1, 1]} : vector<16x32xf32> to vector<1x32xf32>
    %28 = vector.broadcast %27 : vector<1x32xf32> to vector<16x32xf32>
    %29 = arith.mulf %26, %28 : vector<16x32xf32>
    %30 = arith.addf %25, %29 : vector<16x32xf32>
    %31 = arith.addf %21, %30 : vector<16x32xf32>
    %32 = vector.extract_strided_slice %18 {offsets = [13, 0], sizes = [16, 32], strides = [1, 1]} : vector<32x32xf32> to vector<16x32xf32>
    %33 = vector.extract_strided_slice %4 {offsets = [3, 0], sizes = [1, 32], strides = [1, 1]} : vector<16x32xf32> to vector<1x32xf32>
    %34 = vector.broadcast %33 : vector<1x32xf32> to vector<16x32xf32>
    %35 = arith.mulf %32, %34 : vector<16x32xf32>
    %36 = vector.extract_strided_slice %18 {offsets = [12, 0], sizes = [16, 32], strides = [1, 1]} : vector<32x32xf32> to vector<16x32xf32>
    %37 = vector.extract_strided_slice %4 {offsets = [4, 0], sizes = [1, 32], strides = [1, 1]} : vector<16x32xf32> to vector<1x32xf32>
    %38 = vector.broadcast %37 : vector<1x32xf32> to vector<16x32xf32>
    %39 = arith.mulf %36, %38 : vector<16x32xf32>
    %40 = arith.addf %35, %39 : vector<16x32xf32>
    %41 = arith.addf %31, %40 : vector<16x32xf32>
    %42 = vector.extract_strided_slice %18 {offsets = [11, 0], sizes = [16, 32], strides = [1, 1]} : vector<32x32xf32> to vector<16x32xf32>
    %43 = vector.extract_strided_slice %4 {offsets = [5, 0], sizes = [1, 32], strides = [1, 1]} : vector<16x32xf32> to vector<1x32xf32>
    %44 = vector.broadcast %43 : vector<1x32xf32> to vector<16x32xf32>
    %45 = arith.mulf %42, %44 : vector<16x32xf32>
    %46 = vector.extract_strided_slice %18 {offsets = [10, 0], sizes = [16, 32], strides = [1, 1]} : vector<32x32xf32> to vector<16x32xf32>
    %47 = vector.extract_strided_slice %4 {offsets = [6, 0], sizes = [1, 32], strides = [1, 1]} : vector<16x32xf32> to vector<1x32xf32>
    %48 = vector.broadcast %47 : vector<1x32xf32> to vector<16x32xf32>
    %49 = arith.mulf %46, %48 : vector<16x32xf32>
    %50 = arith.addf %45, %49 : vector<16x32xf32>
    %51 = arith.addf %41, %50 : vector<16x32xf32>
    %52 = vector.extract_strided_slice %18 {offsets = [9, 0], sizes = [16, 32], strides = [1, 1]} : vector<32x32xf32> to vector<16x32xf32>
    %53 = vector.extract_strided_slice %4 {offsets = [7, 0], sizes = [1, 32], strides = [1, 1]} : vector<16x32xf32> to vector<1x32xf32>
    %54 = vector.broadcast %53 : vector<1x32xf32> to vector<16x32xf32>
    %55 = arith.mulf %52, %54 : vector<16x32xf32>
    %56 = vector.extract_strided_slice %18 {offsets = [8, 0], sizes = [16, 32], strides = [1, 1]} : vector<32x32xf32> to vector<16x32xf32>
    %57 = vector.extract_strided_slice %4 {offsets = [8, 0], sizes = [1, 32], strides = [1, 1]} : vector<16x32xf32> to vector<1x32xf32>
    %58 = vector.broadcast %57 : vector<1x32xf32> to vector<16x32xf32>
    %59 = arith.mulf %56, %58 : vector<16x32xf32>
    %60 = arith.addf %55, %59 : vector<16x32xf32>
    %61 = arith.addf %51, %60 : vector<16x32xf32>
    %62 = vector.extract_strided_slice %18 {offsets = [7, 0], sizes = [16, 32], strides = [1, 1]} : vector<32x32xf32> to vector<16x32xf32>
    %63 = vector.extract_strided_slice %4 {offsets = [9, 0], sizes = [1, 32], strides = [1, 1]} : vector<16x32xf32> to vector<1x32xf32>
    %64 = vector.broadcast %63 : vector<1x32xf32> to vector<16x32xf32>
    %65 = arith.mulf %62, %64 : vector<16x32xf32>
    %66 = vector.extract_strided_slice %18 {offsets = [6, 0], sizes = [16, 32], strides = [1, 1]} : vector<32x32xf32> to vector<16x32xf32>
    %67 = vector.extract_strided_slice %4 {offsets = [10, 0], sizes = [1, 32], strides = [1, 1]} : vector<16x32xf32> to vector<1x32xf32>
    %68 = vector.broadcast %67 : vector<1x32xf32> to vector<16x32xf32>
    %69 = arith.mulf %66, %68 : vector<16x32xf32>
    %70 = arith.addf %65, %69 : vector<16x32xf32>
    %71 = arith.addf %61, %70 : vector<16x32xf32>
    %72 = vector.extract_strided_slice %18 {offsets = [5, 0], sizes = [16, 32], strides = [1, 1]} : vector<32x32xf32> to vector<16x32xf32>
    %73 = vector.extract_strided_slice %4 {offsets = [11, 0], sizes = [1, 32], strides = [1, 1]} : vector<16x32xf32> to vector<1x32xf32>
    %74 = vector.broadcast %73 : vector<1x32xf32> to vector<16x32xf32>
    %75 = arith.mulf %72, %74 : vector<16x32xf32>
    %76 = vector.extract_strided_slice %18 {offsets = [4, 0], sizes = [16, 32], strides = [1, 1]} : vector<32x32xf32> to vector<16x32xf32>
    %77 = vector.extract_strided_slice %4 {offsets = [12, 0], sizes = [1, 32], strides = [1, 1]} : vector<16x32xf32> to vector<1x32xf32>
    %78 = vector.broadcast %77 : vector<1x32xf32> to vector<16x32xf32>
    %79 = arith.mulf %76, %78 : vector<16x32xf32>
    %80 = arith.addf %75, %79 : vector<16x32xf32>
    %81 = arith.addf %71, %80 : vector<16x32xf32>
    %82 = vector.extract_strided_slice %18 {offsets = [3, 0], sizes = [16, 32], strides = [1, 1]} : vector<32x32xf32> to vector<16x32xf32>
    %83 = vector.extract_strided_slice %4 {offsets = [13, 0], sizes = [1, 32], strides = [1, 1]} : vector<16x32xf32> to vector<1x32xf32>
    %84 = vector.broadcast %83 : vector<1x32xf32> to vector<16x32xf32>
    %85 = arith.mulf %82, %84 : vector<16x32xf32>
    %86 = vector.extract_strided_slice %18 {offsets = [2, 0], sizes = [16, 32], strides = [1, 1]} : vector<32x32xf32> to vector<16x32xf32>
    %87 = vector.extract_strided_slice %4 {offsets = [14, 0], sizes = [1, 32], strides = [1, 1]} : vector<16x32xf32> to vector<1x32xf32>
    %88 = vector.broadcast %87 : vector<1x32xf32> to vector<16x32xf32>
    %89 = arith.mulf %86, %88 : vector<16x32xf32>
    %90 = arith.addf %85, %89 : vector<16x32xf32>
    %91 = arith.addf %81, %90 : vector<16x32xf32>
    %92 = vector.extract_strided_slice %18 {offsets = [1, 0], sizes = [16, 32], strides = [1, 1]} : vector<32x32xf32> to vector<16x32xf32>
    %93 = vector.extract_strided_slice %4 {offsets = [15, 0], sizes = [1, 32], strides = [1, 1]} : vector<16x32xf32> to vector<1x32xf32>
    %94 = vector.broadcast %93 : vector<1x32xf32> to vector<16x32xf32>
    %95 = arith.mulf %92, %94 : vector<16x32xf32>
    %96 = arith.addf %91, %95 : vector<16x32xf32>
    %97 = vector.extract_strided_slice %0 {offsets = [16, 0], sizes = [16, 32], strides = [1, 1]} : vector<32x32xf32> to vector<16x32xf32>
    %98 = tpu.concatenate %1, %97 in 0 : vector<16x32xf32>, vector<16x32xf32> -> vector<32x32xf32>
    %99 = vector.extract_strided_slice %4 {offsets = [0, 0], sizes = [1, 32], strides = [1, 1]} : vector<16x32xf32> to vector<1x32xf32>
    %100 = vector.broadcast %99 : vector<1x32xf32> to vector<16x32xf32>
    %101 = arith.mulf %97, %100 : vector<16x32xf32>
    %102 = vector.extract_strided_slice %98 {offsets = [15, 0], sizes = [16, 32], strides = [1, 1]} : vector<32x32xf32> to vector<16x32xf32>
    %103 = vector.extract_strided_slice %4 {offsets = [1, 0], sizes = [1, 32], strides = [1, 1]} : vector<16x32xf32> to vector<1x32xf32>
    %104 = vector.broadcast %103 : vector<1x32xf32> to vector<16x32xf32>
    %105 = arith.mulf %102, %104 : vector<16x32xf32>
    %106 = vector.extract_strided_slice %98 {offsets = [14, 0], sizes = [16, 32], strides = [1, 1]} : vector<32x32xf32> to vector<16x32xf32>
    %107 = vector.extract_strided_slice %4 {offsets = [2, 0], sizes = [1, 32], strides = [1, 1]} : vector<16x32xf32> to vector<1x32xf32>
    %108 = vector.broadcast %107 : vector<1x32xf32> to vector<16x32xf32>
    %109 = arith.mulf %106, %108 : vector<16x32xf32>
    %110 = arith.addf %105, %109 : vector<16x32xf32>
    %111 = arith.addf %101, %110 : vector<16x32xf32>
    %112 = vector.extract_strided_slice %98 {offsets = [13, 0], sizes = [16, 32], strides = [1, 1]} : vector<32x32xf32> to vector<16x32xf32>
    %113 = vector.extract_strided_slice %4 {offsets = [3, 0], sizes = [1, 32], strides = [1, 1]} : vector<16x32xf32> to vector<1x32xf32>
    %114 = vector.broadcast %113 : vector<1x32xf32> to vector<16x32xf32>
    %115 = arith.mulf %112, %114 : vector<16x32xf32>
    %116 = vector.extract_strided_slice %98 {offsets = [12, 0], sizes = [16, 32], strides = [1, 1]} : vector<32x32xf32> to vector<16x32xf32>
    %117 = vector.extract_strided_slice %4 {offsets = [4, 0], sizes = [1, 32], strides = [1, 1]} : vector<16x32xf32> to vector<1x32xf32>
    %118 = vector.broadcast %117 : vector<1x32xf32> to vector<16x32xf32>
    %119 = arith.mulf %116, %118 : vector<16x32xf32>
    %120 = arith.addf %115, %119 : vector<16x32xf32>
    %121 = arith.addf %111, %120 : vector<16x32xf32>
    %122 = vector.extract_strided_slice %98 {offsets = [11, 0], sizes = [16, 32], strides = [1, 1]} : vector<32x32xf32> to vector<16x32xf32>
    %123 = vector.extract_strided_slice %4 {offsets = [5, 0], sizes = [1, 32], strides = [1, 1]} : vector<16x32xf32> to vector<1x32xf32>
    %124 = vector.broadcast %123 : vector<1x32xf32> to vector<16x32xf32>
    %125 = arith.mulf %122, %124 : vector<16x32xf32>
    %126 = vector.extract_strided_slice %98 {offsets = [10, 0], sizes = [16, 32], strides = [1, 1]} : vector<32x32xf32> to vector<16x32xf32>
    %127 = vector.extract_strided_slice %4 {offsets = [6, 0], sizes = [1, 32], strides = [1, 1]} : vector<16x32xf32> to vector<1x32xf32>
    %128 = vector.broadcast %127 : vector<1x32xf32> to vector<16x32xf32>
    %129 = arith.mulf %126, %128 : vector<16x32xf32>
    %130 = arith.addf %125, %129 : vector<16x32xf32>
    %131 = arith.addf %121, %130 : vector<16x32xf32>
    %132 = vector.extract_strided_slice %98 {offsets = [9, 0], sizes = [16, 32], strides = [1, 1]} : vector<32x32xf32> to vector<16x32xf32>
    %133 = vector.extract_strided_slice %4 {offsets = [7, 0], sizes = [1, 32], strides = [1, 1]} : vector<16x32xf32> to vector<1x32xf32>
    %134 = vector.broadcast %133 : vector<1x32xf32> to vector<16x32xf32>
    %135 = arith.mulf %132, %134 : vector<16x32xf32>
    %136 = vector.extract_strided_slice %98 {offsets = [8, 0], sizes = [16, 32], strides = [1, 1]} : vector<32x32xf32> to vector<16x32xf32>
    %137 = vector.extract_strided_slice %4 {offsets = [8, 0], sizes = [1, 32], strides = [1, 1]} : vector<16x32xf32> to vector<1x32xf32>
    %138 = vector.broadcast %137 : vector<1x32xf32> to vector<16x32xf32>
    %139 = arith.mulf %136, %138 : vector<16x32xf32>
    %140 = arith.addf %135, %139 : vector<16x32xf32>
    %141 = arith.addf %131, %140 : vector<16x32xf32>
    %142 = vector.extract_strided_slice %98 {offsets = [7, 0], sizes = [16, 32], strides = [1, 1]} : vector<32x32xf32> to vector<16x32xf32>
    %143 = vector.extract_strided_slice %4 {offsets = [9, 0], sizes = [1, 32], strides = [1, 1]} : vector<16x32xf32> to vector<1x32xf32>
    %144 = vector.broadcast %143 : vector<1x32xf32> to vector<16x32xf32>
    %145 = arith.mulf %142, %144 : vector<16x32xf32>
    %146 = vector.extract_strided_slice %98 {offsets = [6, 0], sizes = [16, 32], strides = [1, 1]} : vector<32x32xf32> to vector<16x32xf32>
    %147 = vector.extract_strided_slice %4 {offsets = [10, 0], sizes = [1, 32], strides = [1, 1]} : vector<16x32xf32> to vector<1x32xf32>
    %148 = vector.broadcast %147 : vector<1x32xf32> to vector<16x32xf32>
    %149 = arith.mulf %146, %148 : vector<16x32xf32>
    %150 = arith.addf %145, %149 : vector<16x32xf32>
    %151 = arith.addf %141, %150 : vector<16x32xf32>
    %152 = vector.extract_strided_slice %98 {offsets = [5, 0], sizes = [16, 32], strides = [1, 1]} : vector<32x32xf32> to vector<16x32xf32>
    %153 = vector.extract_strided_slice %4 {offsets = [11, 0], sizes = [1, 32], strides = [1, 1]} : vector<16x32xf32> to vector<1x32xf32>
    %154 = vector.broadcast %153 : vector<1x32xf32> to vector<16x32xf32>
    %155 = arith.mulf %152, %154 : vector<16x32xf32>
    %156 = vector.extract_strided_slice %98 {offsets = [4, 0], sizes = [16, 32], strides = [1, 1]} : vector<32x32xf32> to vector<16x32xf32>
    %157 = vector.extract_strided_slice %4 {offsets = [12, 0], sizes = [1, 32], strides = [1, 1]} : vector<16x32xf32> to vector<1x32xf32>
    %158 = vector.broadcast %157 : vector<1x32xf32> to vector<16x32xf32>
    %159 = arith.mulf %156, %158 : vector<16x32xf32>
    %160 = arith.addf %155, %159 : vector<16x32xf32>
    %161 = arith.addf %151, %160 : vector<16x32xf32>
    %162 = vector.extract_strided_slice %98 {offsets = [3, 0], sizes = [16, 32], strides = [1, 1]} : vector<32x32xf32> to vector<16x32xf32>
    %163 = vector.extract_strided_slice %4 {offsets = [13, 0], sizes = [1, 32], strides = [1, 1]} : vector<16x32xf32> to vector<1x32xf32>
    %164 = vector.broadcast %163 : vector<1x32xf32> to vector<16x32xf32>
    %165 = arith.mulf %162, %164 : vector<16x32xf32>
    %166 = vector.extract_strided_slice %98 {offsets = [2, 0], sizes = [16, 32], strides = [1, 1]} : vector<32x32xf32> to vector<16x32xf32>
    %167 = vector.extract_strided_slice %4 {offsets = [14, 0], sizes = [1, 32], strides = [1, 1]} : vector<16x32xf32> to vector<1x32xf32>
    %168 = vector.broadcast %167 : vector<1x32xf32> to vector<16x32xf32>
    %169 = arith.mulf %166, %168 : vector<16x32xf32>
    %170 = arith.addf %165, %169 : vector<16x32xf32>
    %171 = arith.addf %161, %170 : vector<16x32xf32>
    %172 = vector.extract_strided_slice %98 {offsets = [1, 0], sizes = [16, 32], strides = [1, 1]} : vector<32x32xf32> to vector<16x32xf32>
    %173 = vector.extract_strided_slice %4 {offsets = [15, 0], sizes = [1, 32], strides = [1, 1]} : vector<16x32xf32> to vector<1x32xf32>
    %174 = vector.broadcast %173 : vector<1x32xf32> to vector<16x32xf32>
    %175 = arith.mulf %172, %174 : vector<16x32xf32>
    %176 = arith.addf %171, %175 : vector<16x32xf32>
    %177 = tpu.concatenate %96, %176 in 0 : vector<16x32xf32>, vector<16x32xf32> -> vector<32x32xf32>
    %178 = vector.broadcast %6 : vector<1x32xf32> to vector<32x32xf32>
    %179 = arith.mulf %0, %178 : vector<32x32xf32>
    %180 = arith.addf %177, %179 : vector<32x32xf32>
    %181 = arith.mulf %180, %180 : vector<32x32xf32>
    %182 = arith.mulf %180, %181 : vector<32x32xf32>
    %cst_11 = arith.constant 4.471500e-02 : f32
    %183 = vector.broadcast %cst_11 : f32 to vector<32x32xf32>
    %184 = arith.mulf %183, %182 : vector<32x32xf32>
    %185 = arith.addf %180, %184 : vector<32x32xf32>
    %cst_12 = arith.constant 0.797884583 : f32
    %186 = vector.broadcast %cst_12 : f32 to vector<32x32xf32>
    %187 = arith.mulf %186, %185 : vector<32x32xf32>
    %188 = math.tanh %187 : vector<32x32xf32>
    %cst_13 = arith.constant 1.000000e+00 : f32
    %189 = vector.broadcast %cst_13 : f32 to vector<32x32xf32>
    %190 = arith.addf %189, %188 : vector<32x32xf32>
    %cst_14 = arith.constant 5.000000e-01 : f32
    %191 = vector.broadcast %cst_14 : f32 to vector<32x32xf32>
    %192 = arith.mulf %191, %190 : vector<32x32xf32>
    %193 = arith.mulf %180, %192 : vector<32x32xf32>
    %194 = arith.truncf %193 : vector<32x32xf32> to vector<32x32xbf16>
    %cst_15 = arith.constant dense<0.000000e+00> : vector<32x32xf32>
    %195 = tpu.matmul %194, %14, %cst_15 {dimension_numbers = #tpu.dot_dimension_numbers<[1], [0], [0], [1], [0, 0, 1, 1], [], []>} : vector<32x32xbf16>, vector<32x32xbf16>, vector<32x32xf32> -> vector<32x32xf32>
    %196 = vector.broadcast %7 : vector<1x32xf32> to vector<32x32xf32>
    %197 = arith.addf %195, %196 : vector<32x32xf32>
    %198 = arith.addf %0, %197 : vector<32x32xf32>
    %cst_16 = arith.constant dense<0.000000e+00> : vector<32xf32>
    %199 = vector.multi_reduction <add>, %198, %cst_16 [1] : vector<32x32xf32> to vector<32xf32>
    %200 = vector.shape_cast %199 : vector<32xf32> to vector<32x1xf32>
    %cst_17 = arith.constant 3.200000e+01 : f32
    %201 = vector.broadcast %cst_17 : f32 to vector<32x1xf32>
    %202 = arith.divf %200, %201 : vector<32x1xf32>
    %203 = vector.broadcast %202 : vector<32x1xf32> to vector<32x32xf32>
    %204 = arith.subf %198, %203 : vector<32x32xf32>
    %205 = arith.mulf %204, %204 : vector<32x32xf32>
    %cst_18 = arith.constant dense<0.000000e+00> : vector<32xf32>
    %206 = vector.multi_reduction <add>, %205, %cst_18 [1] : vector<32x32xf32> to vector<32xf32>
    %207 = vector.shape_cast %206 : vector<32xf32> to vector<32x1xf32>
    %cst_19 = arith.constant 3.200000e+01 : f32
    %208 = vector.broadcast %cst_19 : f32 to vector<32x1xf32>
    %209 = arith.divf %207, %208 : vector<32x1xf32>
    %cst_20 = arith.constant 9.99999974E-6 : f32
    %210 = vector.broadcast %cst_20 : f32 to vector<32x1xf32>
    %211 = arith.addf %209, %210 : vector<32x1xf32>
    %212 = math.rsqrt %211 : vector<32x1xf32>
    %213 = vector.broadcast %212 : vector<32x1xf32> to vector<32x32xf32>
    %214 = arith.mulf %204, %213 : vector<32x32xf32>
    %215 = vector.broadcast %8 : vector<1x32xf32> to vector<32x32xf32>
    %216 = arith.mulf %214, %215 : vector<32x32xf32>
    %217 = vector.broadcast %9 : vector<1x32xf32> to vector<32x32xf32>
    %218 = arith.addf %216, %217 : vector<32x32xf32>
    %219 = arith.truncf %218 : vector<32x32xf32> to vector<32x32xbf16>
    %cst_21 = arith.constant dense<0.000000e+00> : vector<32x64xf32>
    %220 = tpu.matmul %219, %16, %cst_21 {dimension_numbers = #tpu.dot_dimension_numbers<[1], [0], [0], [1], [0, 0, 1, 1], [], []>} : vector<32x32xbf16>, vector<32x64xbf16>, vector<32x64xf32> -> vector<32x64xf32>
    %221 = vector.broadcast %13 : vector<1x64xf32> to vector<32x64xf32>
    %222 = arith.addf %220, %221 : vector<32x64xf32>
    %cst_22 = arith.constant 0.000000e+00 : f32
    %223 = vector.broadcast %cst_22 : f32 to vector<32x64xf32>
    %224 = arith.maximumf %222, %223 : vector<32x64xf32>
    %225 = arith.truncf %224 : vector<32x64xf32> to vector<32x64xbf16>
    %cst_23 = arith.constant dense<0.000000e+00> : vector<32x32xf32>
    %226 = tpu.matmul %225, %15, %cst_23 {dimension_numbers = #tpu.dot_dimension_numbers<[1], [0], [0], [1], [0, 0, 1, 1], [], []>} : vector<32x64xbf16>, vector<64x32xbf16>, vector<32x32xf32> -> vector<32x32xf32>
    %227 = vector.broadcast %10 : vector<1x32xf32> to vector<32x32xf32>
    %228 = arith.addf %226, %227 : vector<32x32xf32>
    %229 = arith.addf %218, %228 : vector<32x32xf32>
    %cst_24 = arith.constant dense<0.000000e+00> : vector<32xf32>
    %230 = vector.multi_reduction <add>, %229, %cst_24 [1] : vector<32x32xf32> to vector<32xf32>
    %231 = vector.shape_cast %230 : vector<32xf32> to vector<32x1xf32>
    %cst_25 = arith.constant 3.200000e+01 : f32
    %232 = vector.broadcast %cst_25 : f32 to vector<32x1xf32>
    %233 = arith.divf %231, %232 : vector<32x1xf32>
    %234 = vector.broadcast %233 : vector<32x1xf32> to vector<32x32xf32>
    %235 = arith.subf %229, %234 : vector<32x32xf32>
    %236 = arith.mulf %235, %235 : vector<32x32xf32>
    %cst_26 = arith.constant dense<0.000000e+00> : vector<32xf32>
    %237 = vector.multi_reduction <add>, %236, %cst_26 [1] : vector<32x32xf32> to vector<32xf32>
    %238 = vector.shape_cast %237 : vector<32xf32> to vector<32x1xf32>
    %cst_27 = arith.constant 3.200000e+01 : f32
    %239 = vector.broadcast %cst_27 : f32 to vector<32x1xf32>
    %240 = arith.divf %238, %239 : vector<32x1xf32>
    %cst_28 = arith.constant 9.99999974E-6 : f32
    %241 = vector.broadcast %cst_28 : f32 to vector<32x1xf32>
    %242 = arith.addf %240, %241 : vector<32x1xf32>
    %243 = math.rsqrt %242 : vector<32x1xf32>
    %244 = vector.broadcast %243 : vector<32x1xf32> to vector<32x32xf32>
    %245 = arith.mulf %235, %244 : vector<32x32xf32>
    %246 = vector.broadcast %11 : vector<1x32xf32> to vector<32x32xf32>
    %247 = arith.mulf %245, %246 : vector<32x32xf32>
    %248 = vector.broadcast %12 : vector<1x32xf32> to vector<32x32xf32>
    %249 = arith.addf %247, %248 : vector<32x32xf32>
    %c1 = arith.constant 1 : index
    %c0_29 = arith.constant 0 : index
    %c0_30 = arith.constant 0 : index
    %250 = vector.load %arg4[%c1, %c0_29, %c0_30] : memref<2x24x32xf32, #tpu.memory_space<vmem>>, vector<1x24x32xf32>
    %251 = vector.shape_cast %250 : vector<1x24x32xf32> to vector<24x32xf32>
    %252 = vector.extract_strided_slice %251 {offsets = [0, 0], sizes = [16, 32], strides = [1, 1]} : vector<24x32xf32> to vector<16x32xf32>
    %253 = vector.extract_strided_slice %251 {offsets = [16, 0], sizes = [8, 32], strides = [1, 1]} : vector<24x32xf32> to vector<8x32xf32>
    %254 = vector.extract_strided_slice %253 {offsets = [0, 0], sizes = [1, 32], strides = [1, 1]} : vector<8x32xf32> to vector<1x32xf32>
    %255 = vector.extract_strided_slice %253 {offsets = [1, 0], sizes = [1, 32], strides = [1, 1]} : vector<8x32xf32> to vector<1x32xf32>
    %256 = vector.extract_strided_slice %253 {offsets = [2, 0], sizes = [1, 32], strides = [1, 1]} : vector<8x32xf32> to vector<1x32xf32>
    %257 = vector.extract_strided_slice %253 {offsets = [3, 0], sizes = [1, 32], strides = [1, 1]} : vector<8x32xf32> to vector<1x32xf32>
    %258 = vector.extract_strided_slice %253 {offsets = [4, 0], sizes = [1, 32], strides = [1, 1]} : vector<8x32xf32> to vector<1x32xf32>
    %259 = vector.extract_strided_slice %253 {offsets = [5, 0], sizes = [1, 32], strides = [1, 1]} : vector<8x32xf32> to vector<1x32xf32>
    %260 = vector.extract_strided_slice %253 {offsets = [6, 0], sizes = [1, 32], strides = [1, 1]} : vector<8x32xf32> to vector<1x32xf32>
    %c1_31 = arith.constant 1 : index
    %c0_32 = arith.constant 0 : index
    %261 = vector.load %arg5[%c1_31, %c0_32] : memref<4x64xf32, #tpu.memory_space<vmem>>, vector<1x64xf32>
    %c96 = arith.constant 96 : index
    %c0_33 = arith.constant 0 : index
    %262 = vector.load %arg2[%c96, %c0_33] : memref<192x32xbf16, #tpu.memory_space<vmem>>, vector<32x32xbf16>
    %c128 = arith.constant 128 : index
    %c0_34 = arith.constant 0 : index
    %263 = vector.load %arg2[%c128, %c0_34] : memref<192x32xbf16, #tpu.memory_space<vmem>>, vector<64x32xbf16>
    %c32_35 = arith.constant 32 : index
    %c0_36 = arith.constant 0 : index
    %264 = vector.load %arg3[%c32_35, %c0_36] : memref<160x64xbf16, #tpu.memory_space<vmem>>, vector<32x64xbf16>
    %265 = vector.extract_strided_slice %249 {offsets = [0, 0], sizes = [16, 32], strides = [1, 1]} : vector<32x32xf32> to vector<16x32xf32>
    %266 = tpu.concatenate %1, %265 in 0 : vector<16x32xf32>, vector<16x32xf32> -> vector<32x32xf32>
    %267 = vector.extract_strided_slice %252 {offsets = [0, 0], sizes = [1, 32], strides = [1, 1]} : vector<16x32xf32> to vector<1x32xf32>
    %268 = vector.broadcast %267 : vector<1x32xf32> to vector<16x32xf32>
    %269 = arith.mulf %265, %268 : vector<16x32xf32>
    %270 = vector.extract_strided_slice %266 {offsets = [15, 0], sizes = [16, 32], strides = [1, 1]} : vector<32x32xf32> to vector<16x32xf32>
    %271 = vector.extract_strided_slice %252 {offsets = [1, 0], sizes = [1, 32], strides = [1, 1]} : vector<16x32xf32> to vector<1x32xf32>
    %272 = vector.broadcast %271 : vector<1x32xf32> to vector<16x32xf32>
    %273 = arith.mulf %270, %272 : vector<16x32xf32>
    %274 = vector.extract_strided_slice %266 {offsets = [14, 0], sizes = [16, 32], strides = [1, 1]} : vector<32x32xf32> to vector<16x32xf32>
    %275 = vector.extract_strided_slice %252 {offsets = [2, 0], sizes = [1, 32], strides = [1, 1]} : vector<16x32xf32> to vector<1x32xf32>
    %276 = vector.broadcast %275 : vector<1x32xf32> to vector<16x32xf32>
    %277 = arith.mulf %274, %276 : vector<16x32xf32>
    %278 = arith.addf %273, %277 : vector<16x32xf32>
    %279 = arith.addf %269, %278 : vector<16x32xf32>
    %280 = vector.extract_strided_slice %266 {offsets = [13, 0], sizes = [16, 32], strides = [1, 1]} : vector<32x32xf32> to vector<16x32xf32>
    %281 = vector.extract_strided_slice %252 {offsets = [3, 0], sizes = [1, 32], strides = [1, 1]} : vector<16x32xf32> to vector<1x32xf32>
    %282 = vector.broadcast %281 : vector<1x32xf32> to vector<16x32xf32>
    %283 = arith.mulf %280, %282 : vector<16x32xf32>
    %284 = vector.extract_strided_slice %266 {offsets = [12, 0], sizes = [16, 32], strides = [1, 1]} : vector<32x32xf32> to vector<16x32xf32>
    %285 = vector.extract_strided_slice %252 {offsets = [4, 0], sizes = [1, 32], strides = [1, 1]} : vector<16x32xf32> to vector<1x32xf32>
    %286 = vector.broadcast %285 : vector<1x32xf32> to vector<16x32xf32>
    %287 = arith.mulf %284, %286 : vector<16x32xf32>
    %288 = arith.addf %283, %287 : vector<16x32xf32>
    %289 = arith.addf %279, %288 : vector<16x32xf32>
    %290 = vector.extract_strided_slice %266 {offsets = [11, 0], sizes = [16, 32], strides = [1, 1]} : vector<32x32xf32> to vector<16x32xf32>
    %291 = vector.extract_strided_slice %252 {offsets = [5, 0], sizes = [1, 32], strides = [1, 1]} : vector<16x32xf32> to vector<1x32xf32>
    %292 = vector.broadcast %291 : vector<1x32xf32> to vector<16x32xf32>
    %293 = arith.mulf %290, %292 : vector<16x32xf32>
    %294 = vector.extract_strided_slice %266 {offsets = [10, 0], sizes = [16, 32], strides = [1, 1]} : vector<32x32xf32> to vector<16x32xf32>
    %295 = vector.extract_strided_slice %252 {offsets = [6, 0], sizes = [1, 32], strides = [1, 1]} : vector<16x32xf32> to vector<1x32xf32>
    %296 = vector.broadcast %295 : vector<1x32xf32> to vector<16x32xf32>
    %297 = arith.mulf %294, %296 : vector<16x32xf32>
    %298 = arith.addf %293, %297 : vector<16x32xf32>
    %299 = arith.addf %289, %298 : vector<16x32xf32>
    %300 = vector.extract_strided_slice %266 {offsets = [9, 0], sizes = [16, 32], strides = [1, 1]} : vector<32x32xf32> to vector<16x32xf32>
    %301 = vector.extract_strided_slice %252 {offsets = [7, 0], sizes = [1, 32], strides = [1, 1]} : vector<16x32xf32> to vector<1x32xf32>
    %302 = vector.broadcast %301 : vector<1x32xf32> to vector<16x32xf32>
    %303 = arith.mulf %300, %302 : vector<16x32xf32>
    %304 = vector.extract_strided_slice %266 {offsets = [8, 0], sizes = [16, 32], strides = [1, 1]} : vector<32x32xf32> to vector<16x32xf32>
    %305 = vector.extract_strided_slice %252 {offsets = [8, 0], sizes = [1, 32], strides = [1, 1]} : vector<16x32xf32> to vector<1x32xf32>
    %306 = vector.broadcast %305 : vector<1x32xf32> to vector<16x32xf32>
    %307 = arith.mulf %304, %306 : vector<16x32xf32>
    %308 = arith.addf %303, %307 : vector<16x32xf32>
    %309 = arith.addf %299, %308 : vector<16x32xf32>
    %310 = vector.extract_strided_slice %266 {offsets = [7, 0], sizes = [16, 32], strides = [1, 1]} : vector<32x32xf32> to vector<16x32xf32>
    %311 = vector.extract_strided_slice %252 {offsets = [9, 0], sizes = [1, 32], strides = [1, 1]} : vector<16x32xf32> to vector<1x32xf32>
    %312 = vector.broadcast %311 : vector<1x32xf32> to vector<16x32xf32>
    %313 = arith.mulf %310, %312 : vector<16x32xf32>
    %314 = vector.extract_strided_slice %266 {offsets = [6, 0], sizes = [16, 32], strides = [1, 1]} : vector<32x32xf32> to vector<16x32xf32>
    %315 = vector.extract_strided_slice %252 {offsets = [10, 0], sizes = [1, 32], strides = [1, 1]} : vector<16x32xf32> to vector<1x32xf32>
    %316 = vector.broadcast %315 : vector<1x32xf32> to vector<16x32xf32>
    %317 = arith.mulf %314, %316 : vector<16x32xf32>
    %318 = arith.addf %313, %317 : vector<16x32xf32>
    %319 = arith.addf %309, %318 : vector<16x32xf32>
    %320 = vector.extract_strided_slice %266 {offsets = [5, 0], sizes = [16, 32], strides = [1, 1]} : vector<32x32xf32> to vector<16x32xf32>
    %321 = vector.extract_strided_slice %252 {offsets = [11, 0], sizes = [1, 32], strides = [1, 1]} : vector<16x32xf32> to vector<1x32xf32>
    %322 = vector.broadcast %321 : vector<1x32xf32> to vector<16x32xf32>
    %323 = arith.mulf %320, %322 : vector<16x32xf32>
    %324 = vector.extract_strided_slice %266 {offsets = [4, 0], sizes = [16, 32], strides = [1, 1]} : vector<32x32xf32> to vector<16x32xf32>
    %325 = vector.extract_strided_slice %252 {offsets = [12, 0], sizes = [1, 32], strides = [1, 1]} : vector<16x32xf32> to vector<1x32xf32>
    %326 = vector.broadcast %325 : vector<1x32xf32> to vector<16x32xf32>
    %327 = arith.mulf %324, %326 : vector<16x32xf32>
    %328 = arith.addf %323, %327 : vector<16x32xf32>
    %329 = arith.addf %319, %328 : vector<16x32xf32>
    %330 = vector.extract_strided_slice %266 {offsets = [3, 0], sizes = [16, 32], strides = [1, 1]} : vector<32x32xf32> to vector<16x32xf32>
    %331 = vector.extract_strided_slice %252 {offsets = [13, 0], sizes = [1, 32], strides = [1, 1]} : vector<16x32xf32> to vector<1x32xf32>
    %332 = vector.broadcast %331 : vector<1x32xf32> to vector<16x32xf32>
    %333 = arith.mulf %330, %332 : vector<16x32xf32>
    %334 = vector.extract_strided_slice %266 {offsets = [2, 0], sizes = [16, 32], strides = [1, 1]} : vector<32x32xf32> to vector<16x32xf32>
    %335 = vector.extract_strided_slice %252 {offsets = [14, 0], sizes = [1, 32], strides = [1, 1]} : vector<16x32xf32> to vector<1x32xf32>
    %336 = vector.broadcast %335 : vector<1x32xf32> to vector<16x32xf32>
    %337 = arith.mulf %334, %336 : vector<16x32xf32>
    %338 = arith.addf %333, %337 : vector<16x32xf32>
    %339 = arith.addf %329, %338 : vector<16x32xf32>
    %340 = vector.extract_strided_slice %266 {offsets = [1, 0], sizes = [16, 32], strides = [1, 1]} : vector<32x32xf32> to vector<16x32xf32>
    %341 = vector.extract_strided_slice %252 {offsets = [15, 0], sizes = [1, 32], strides = [1, 1]} : vector<16x32xf32> to vector<1x32xf32>
    %342 = vector.broadcast %341 : vector<1x32xf32> to vector<16x32xf32>
    %343 = arith.mulf %340, %342 : vector<16x32xf32>
    %344 = arith.addf %339, %343 : vector<16x32xf32>
    %345 = vector.extract_strided_slice %249 {offsets = [16, 0], sizes = [16, 32], strides = [1, 1]} : vector<32x32xf32> to vector<16x32xf32>
    %346 = tpu.concatenate %1, %345 in 0 : vector<16x32xf32>, vector<16x32xf32> -> vector<32x32xf32>
    %347 = vector.extract_strided_slice %252 {offsets = [0, 0], sizes = [1, 32], strides = [1, 1]} : vector<16x32xf32> to vector<1x32xf32>
    %348 = vector.broadcast %347 : vector<1x32xf32> to vector<16x32xf32>
    %349 = arith.mulf %345, %348 : vector<16x32xf32>
    %350 = vector.extract_strided_slice %346 {offsets = [15, 0], sizes = [16, 32], strides = [1, 1]} : vector<32x32xf32> to vector<16x32xf32>
    %351 = vector.extract_strided_slice %252 {offsets = [1, 0], sizes = [1, 32], strides = [1, 1]} : vector<16x32xf32> to vector<1x32xf32>
    %352 = vector.broadcast %351 : vector<1x32xf32> to vector<16x32xf32>
    %353 = arith.mulf %350, %352 : vector<16x32xf32>
    %354 = vector.extract_strided_slice %346 {offsets = [14, 0], sizes = [16, 32], strides = [1, 1]} : vector<32x32xf32> to vector<16x32xf32>
    %355 = vector.extract_strided_slice %252 {offsets = [2, 0], sizes = [1, 32], strides = [1, 1]} : vector<16x32xf32> to vector<1x32xf32>
    %356 = vector.broadcast %355 : vector<1x32xf32> to vector<16x32xf32>
    %357 = arith.mulf %354, %356 : vector<16x32xf32>
    %358 = arith.addf %353, %357 : vector<16x32xf32>
    %359 = arith.addf %349, %358 : vector<16x32xf32>
    %360 = vector.extract_strided_slice %346 {offsets = [13, 0], sizes = [16, 32], strides = [1, 1]} : vector<32x32xf32> to vector<16x32xf32>
    %361 = vector.extract_strided_slice %252 {offsets = [3, 0], sizes = [1, 32], strides = [1, 1]} : vector<16x32xf32> to vector<1x32xf32>
    %362 = vector.broadcast %361 : vector<1x32xf32> to vector<16x32xf32>
    %363 = arith.mulf %360, %362 : vector<16x32xf32>
    %364 = vector.extract_strided_slice %346 {offsets = [12, 0], sizes = [16, 32], strides = [1, 1]} : vector<32x32xf32> to vector<16x32xf32>
    %365 = vector.extract_strided_slice %252 {offsets = [4, 0], sizes = [1, 32], strides = [1, 1]} : vector<16x32xf32> to vector<1x32xf32>
    %366 = vector.broadcast %365 : vector<1x32xf32> to vector<16x32xf32>
    %367 = arith.mulf %364, %366 : vector<16x32xf32>
    %368 = arith.addf %363, %367 : vector<16x32xf32>
    %369 = arith.addf %359, %368 : vector<16x32xf32>
    %370 = vector.extract_strided_slice %346 {offsets = [11, 0], sizes = [16, 32], strides = [1, 1]} : vector<32x32xf32> to vector<16x32xf32>
    %371 = vector.extract_strided_slice %252 {offsets = [5, 0], sizes = [1, 32], strides = [1, 1]} : vector<16x32xf32> to vector<1x32xf32>
    %372 = vector.broadcast %371 : vector<1x32xf32> to vector<16x32xf32>
    %373 = arith.mulf %370, %372 : vector<16x32xf32>
    %374 = vector.extract_strided_slice %346 {offsets = [10, 0], sizes = [16, 32], strides = [1, 1]} : vector<32x32xf32> to vector<16x32xf32>
    %375 = vector.extract_strided_slice %252 {offsets = [6, 0], sizes = [1, 32], strides = [1, 1]} : vector<16x32xf32> to vector<1x32xf32>
    %376 = vector.broadcast %375 : vector<1x32xf32> to vector<16x32xf32>
    %377 = arith.mulf %374, %376 : vector<16x32xf32>
    %378 = arith.addf %373, %377 : vector<16x32xf32>
    %379 = arith.addf %369, %378 : vector<16x32xf32>
    %380 = vector.extract_strided_slice %346 {offsets = [9, 0], sizes = [16, 32], strides = [1, 1]} : vector<32x32xf32> to vector<16x32xf32>
    %381 = vector.extract_strided_slice %252 {offsets = [7, 0], sizes = [1, 32], strides = [1, 1]} : vector<16x32xf32> to vector<1x32xf32>
    %382 = vector.broadcast %381 : vector<1x32xf32> to vector<16x32xf32>
    %383 = arith.mulf %380, %382 : vector<16x32xf32>
    %384 = vector.extract_strided_slice %346 {offsets = [8, 0], sizes = [16, 32], strides = [1, 1]} : vector<32x32xf32> to vector<16x32xf32>
    %385 = vector.extract_strided_slice %252 {offsets = [8, 0], sizes = [1, 32], strides = [1, 1]} : vector<16x32xf32> to vector<1x32xf32>
    %386 = vector.broadcast %385 : vector<1x32xf32> to vector<16x32xf32>
    %387 = arith.mulf %384, %386 : vector<16x32xf32>
    %388 = arith.addf %383, %387 : vector<16x32xf32>
    %389 = arith.addf %379, %388 : vector<16x32xf32>
    %390 = vector.extract_strided_slice %346 {offsets = [7, 0], sizes = [16, 32], strides = [1, 1]} : vector<32x32xf32> to vector<16x32xf32>
    %391 = vector.extract_strided_slice %252 {offsets = [9, 0], sizes = [1, 32], strides = [1, 1]} : vector<16x32xf32> to vector<1x32xf32>
    %392 = vector.broadcast %391 : vector<1x32xf32> to vector<16x32xf32>
    %393 = arith.mulf %390, %392 : vector<16x32xf32>
    %394 = vector.extract_strided_slice %346 {offsets = [6, 0], sizes = [16, 32], strides = [1, 1]} : vector<32x32xf32> to vector<16x32xf32>
    %395 = vector.extract_strided_slice %252 {offsets = [10, 0], sizes = [1, 32], strides = [1, 1]} : vector<16x32xf32> to vector<1x32xf32>
    %396 = vector.broadcast %395 : vector<1x32xf32> to vector<16x32xf32>
    %397 = arith.mulf %394, %396 : vector<16x32xf32>
    %398 = arith.addf %393, %397 : vector<16x32xf32>
    %399 = arith.addf %389, %398 : vector<16x32xf32>
    %400 = vector.extract_strided_slice %346 {offsets = [5, 0], sizes = [16, 32], strides = [1, 1]} : vector<32x32xf32> to vector<16x32xf32>
    %401 = vector.extract_strided_slice %252 {offsets = [11, 0], sizes = [1, 32], strides = [1, 1]} : vector<16x32xf32> to vector<1x32xf32>
    %402 = vector.broadcast %401 : vector<1x32xf32> to vector<16x32xf32>
    %403 = arith.mulf %400, %402 : vector<16x32xf32>
    %404 = vector.extract_strided_slice %346 {offsets = [4, 0], sizes = [16, 32], strides = [1, 1]} : vector<32x32xf32> to vector<16x32xf32>
    %405 = vector.extract_strided_slice %252 {offsets = [12, 0], sizes = [1, 32], strides = [1, 1]} : vector<16x32xf32> to vector<1x32xf32>
    %406 = vector.broadcast %405 : vector<1x32xf32> to vector<16x32xf32>
    %407 = arith.mulf %404, %406 : vector<16x32xf32>
    %408 = arith.addf %403, %407 : vector<16x32xf32>
    %409 = arith.addf %399, %408 : vector<16x32xf32>
    %410 = vector.extract_strided_slice %346 {offsets = [3, 0], sizes = [16, 32], strides = [1, 1]} : vector<32x32xf32> to vector<16x32xf32>
    %411 = vector.extract_strided_slice %252 {offsets = [13, 0], sizes = [1, 32], strides = [1, 1]} : vector<16x32xf32> to vector<1x32xf32>
    %412 = vector.broadcast %411 : vector<1x32xf32> to vector<16x32xf32>
    %413 = arith.mulf %410, %412 : vector<16x32xf32>
    %414 = vector.extract_strided_slice %346 {offsets = [2, 0], sizes = [16, 32], strides = [1, 1]} : vector<32x32xf32> to vector<16x32xf32>
    %415 = vector.extract_strided_slice %252 {offsets = [14, 0], sizes = [1, 32], strides = [1, 1]} : vector<16x32xf32> to vector<1x32xf32>
    %416 = vector.broadcast %415 : vector<1x32xf32> to vector<16x32xf32>
    %417 = arith.mulf %414, %416 : vector<16x32xf32>
    %418 = arith.addf %413, %417 : vector<16x32xf32>
    %419 = arith.addf %409, %418 : vector<16x32xf32>
    %420 = vector.extract_strided_slice %346 {offsets = [1, 0], sizes = [16, 32], strides = [1, 1]} : vector<32x32xf32> to vector<16x32xf32>
    %421 = vector.extract_strided_slice %252 {offsets = [15, 0], sizes = [1, 32], strides = [1, 1]} : vector<16x32xf32> to vector<1x32xf32>
    %422 = vector.broadcast %421 : vector<1x32xf32> to vector<16x32xf32>
    %423 = arith.mulf %420, %422 : vector<16x32xf32>
    %424 = arith.addf %419, %423 : vector<16x32xf32>
    %425 = tpu.concatenate %344, %424 in 0 : vector<16x32xf32>, vector<16x32xf32> -> vector<32x32xf32>
    %426 = vector.broadcast %254 : vector<1x32xf32> to vector<32x32xf32>
    %427 = arith.mulf %249, %426 : vector<32x32xf32>
    %428 = arith.addf %425, %427 : vector<32x32xf32>
    %429 = arith.mulf %428, %428 : vector<32x32xf32>
    %430 = arith.mulf %428, %429 : vector<32x32xf32>
    %cst_37 = arith.constant 4.471500e-02 : f32
    %431 = vector.broadcast %cst_37 : f32 to vector<32x32xf32>
    %432 = arith.mulf %431, %430 : vector<32x32xf32>
    %433 = arith.addf %428, %432 : vector<32x32xf32>
    %cst_38 = arith.constant 0.797884583 : f32
    %434 = vector.broadcast %cst_38 : f32 to vector<32x32xf32>
    %435 = arith.mulf %434, %433 : vector<32x32xf32>
    %436 = math.tanh %435 : vector<32x32xf32>
    %cst_39 = arith.constant 1.000000e+00 : f32
    %437 = vector.broadcast %cst_39 : f32 to vector<32x32xf32>
    %438 = arith.addf %437, %436 : vector<32x32xf32>
    %cst_40 = arith.constant 5.000000e-01 : f32
    %439 = vector.broadcast %cst_40 : f32 to vector<32x32xf32>
    %440 = arith.mulf %439, %438 : vector<32x32xf32>
    %441 = arith.mulf %428, %440 : vector<32x32xf32>
    %442 = arith.truncf %441 : vector<32x32xf32> to vector<32x32xbf16>
    %cst_41 = arith.constant dense<0.000000e+00> : vector<32x32xf32>
    %443 = tpu.matmul %442, %262, %cst_41 {dimension_numbers = #tpu.dot_dimension_numbers<[1], [0], [0], [1], [0, 0, 1, 1], [], []>} : vector<32x32xbf16>, vector<32x32xbf16>, vector<32x32xf32> -> vector<32x32xf32>
    %444 = vector.broadcast %255 : vector<1x32xf32> to vector<32x32xf32>
    %445 = arith.addf %443, %444 : vector<32x32xf32>
    %446 = arith.addf %249, %445 : vector<32x32xf32>
    %cst_42 = arith.constant dense<0.000000e+00> : vector<32xf32>
    %447 = vector.multi_reduction <add>, %446, %cst_42 [1] : vector<32x32xf32> to vector<32xf32>
    %448 = vector.shape_cast %447 : vector<32xf32> to vector<32x1xf32>
    %cst_43 = arith.constant 3.200000e+01 : f32
    %449 = vector.broadcast %cst_43 : f32 to vector<32x1xf32>
    %450 = arith.divf %448, %449 : vector<32x1xf32>
    %451 = vector.broadcast %450 : vector<32x1xf32> to vector<32x32xf32>
    %452 = arith.subf %446, %451 : vector<32x32xf32>
    %453 = arith.mulf %452, %452 : vector<32x32xf32>
    %cst_44 = arith.constant dense<0.000000e+00> : vector<32xf32>
    %454 = vector.multi_reduction <add>, %453, %cst_44 [1] : vector<32x32xf32> to vector<32xf32>
    %455 = vector.shape_cast %454 : vector<32xf32> to vector<32x1xf32>
    %cst_45 = arith.constant 3.200000e+01 : f32
    %456 = vector.broadcast %cst_45 : f32 to vector<32x1xf32>
    %457 = arith.divf %455, %456 : vector<32x1xf32>
    %cst_46 = arith.constant 9.99999974E-6 : f32
    %458 = vector.broadcast %cst_46 : f32 to vector<32x1xf32>
    %459 = arith.addf %457, %458 : vector<32x1xf32>
    %460 = math.rsqrt %459 : vector<32x1xf32>
    %461 = vector.broadcast %460 : vector<32x1xf32> to vector<32x32xf32>
    %462 = arith.mulf %452, %461 : vector<32x32xf32>
    %463 = vector.broadcast %256 : vector<1x32xf32> to vector<32x32xf32>
    %464 = arith.mulf %462, %463 : vector<32x32xf32>
    %465 = vector.broadcast %257 : vector<1x32xf32> to vector<32x32xf32>
    %466 = arith.addf %464, %465 : vector<32x32xf32>
    %467 = arith.truncf %466 : vector<32x32xf32> to vector<32x32xbf16>
    %cst_47 = arith.constant dense<0.000000e+00> : vector<32x64xf32>
    %468 = tpu.matmul %467, %264, %cst_47 {dimension_numbers = #tpu.dot_dimension_numbers<[1], [0], [0], [1], [0, 0, 1, 1], [], []>} : vector<32x32xbf16>, vector<32x64xbf16>, vector<32x64xf32> -> vector<32x64xf32>
    %469 = vector.broadcast %261 : vector<1x64xf32> to vector<32x64xf32>
    %470 = arith.addf %468, %469 : vector<32x64xf32>
    %cst_48 = arith.constant 0.000000e+00 : f32
    %471 = vector.broadcast %cst_48 : f32 to vector<32x64xf32>
    %472 = arith.maximumf %470, %471 : vector<32x64xf32>
    %473 = arith.truncf %472 : vector<32x64xf32> to vector<32x64xbf16>
    %cst_49 = arith.constant dense<0.000000e+00> : vector<32x32xf32>
    %474 = tpu.matmul %473, %263, %cst_49 {dimension_numbers = #tpu.dot_dimension_numbers<[1], [0], [0], [1], [0, 0, 1, 1], [], []>} : vector<32x64xbf16>, vector<64x32xbf16>, vector<32x32xf32> -> vector<32x32xf32>
    %475 = vector.broadcast %258 : vector<1x32xf32> to vector<32x32xf32>
    %476 = arith.addf %474, %475 : vector<32x32xf32>
    %477 = arith.addf %466, %476 : vector<32x32xf32>
    %cst_50 = arith.constant dense<0.000000e+00> : vector<32xf32>
    %478 = vector.multi_reduction <add>, %477, %cst_50 [1] : vector<32x32xf32> to vector<32xf32>
    %479 = vector.shape_cast %478 : vector<32xf32> to vector<32x1xf32>
    %cst_51 = arith.constant 3.200000e+01 : f32
    %480 = vector.broadcast %cst_51 : f32 to vector<32x1xf32>
    %481 = arith.divf %479, %480 : vector<32x1xf32>
    %482 = vector.broadcast %481 : vector<32x1xf32> to vector<32x32xf32>
    %483 = arith.subf %477, %482 : vector<32x32xf32>
    %484 = arith.mulf %483, %483 : vector<32x32xf32>
    %cst_52 = arith.constant dense<0.000000e+00> : vector<32xf32>
    %485 = vector.multi_reduction <add>, %484, %cst_52 [1] : vector<32x32xf32> to vector<32xf32>
    %486 = vector.shape_cast %485 : vector<32xf32> to vector<32x1xf32>
    %cst_53 = arith.constant 3.200000e+01 : f32
    %487 = vector.broadcast %cst_53 : f32 to vector<32x1xf32>
    %488 = arith.divf %486, %487 : vector<32x1xf32>
    %cst_54 = arith.constant 9.99999974E-6 : f32
    %489 = vector.broadcast %cst_54 : f32 to vector<32x1xf32>
    %490 = arith.addf %488, %489 : vector<32x1xf32>
    %491 = math.rsqrt %490 : vector<32x1xf32>
    %492 = vector.broadcast %491 : vector<32x1xf32> to vector<32x32xf32>
    %493 = arith.mulf %483, %492 : vector<32x32xf32>
    %494 = vector.broadcast %259 : vector<1x32xf32> to vector<32x32xf32>
    %495 = arith.mulf %493, %494 : vector<32x32xf32>
    %496 = vector.broadcast %260 : vector<1x32xf32> to vector<32x32xf32>
    %497 = arith.addf %495, %496 : vector<32x32xf32>
    %498 = vector.extract_strided_slice %497 {offsets = [0, 0], sizes = [16, 32], strides = [1, 1]} : vector<32x32xf32> to vector<16x32xf32>
    %cst_55 = arith.constant dense<0.000000e+00> : vector<32xf32>
    %499 = vector.multi_reduction <add>, %498, %cst_55 [0] : vector<16x32xf32> to vector<32xf32>
    %500 = vector.shape_cast %499 : vector<32xf32> to vector<1x32xf32>
    %cst_56 = arith.constant 1.600000e+01 : f32
    %501 = vector.broadcast %cst_56 : f32 to vector<1x32xf32>
    %502 = arith.divf %500, %501 : vector<1x32xf32>
    %503 = vector.extract_strided_slice %497 {offsets = [16, 0], sizes = [16, 32], strides = [1, 1]} : vector<32x32xf32> to vector<16x32xf32>
    %cst_57 = arith.constant dense<0.000000e+00> : vector<32xf32>
    %504 = vector.multi_reduction <add>, %503, %cst_57 [0] : vector<16x32xf32> to vector<32xf32>
    %505 = vector.shape_cast %504 : vector<32xf32> to vector<1x32xf32>
    %cst_58 = arith.constant 1.600000e+01 : f32
    %506 = vector.broadcast %cst_58 : f32 to vector<1x32xf32>
    %507 = arith.divf %505, %506 : vector<1x32xf32>
    %508 = tpu.concatenate %502, %507 in 0 : vector<1x32xf32>, vector<1x32xf32> -> vector<2x32xf32>
    %c64 = arith.constant 64 : index
    %c0_59 = arith.constant 0 : index
    %509 = vector.load %arg3[%c64, %c0_59] : memref<160x64xbf16, #tpu.memory_space<vmem>>, vector<32x64xbf16>
    %c96_60 = arith.constant 96 : index
    %c0_61 = arith.constant 0 : index
    %510 = vector.load %arg3[%c96_60, %c0_61] : memref<160x64xbf16, #tpu.memory_space<vmem>>, vector<64x64xbf16>
    %c2 = arith.constant 2 : index
    %c0_62 = arith.constant 0 : index
    %511 = vector.load %arg5[%c2, %c0_62] : memref<4x64xf32, #tpu.memory_space<vmem>>, vector<1x64xf32>
    %c3 = arith.constant 3 : index
    %c0_63 = arith.constant 0 : index
    %512 = vector.load %arg5[%c3, %c0_63] : memref<4x64xf32, #tpu.memory_space<vmem>>, vector<1x64xf32>
    %513 = arith.truncf %508 : vector<2x32xf32> to vector<2x32xbf16>
    %cst_64 = arith.constant dense<0.000000e+00> : vector<2x64xf32>
    %514 = tpu.matmul %513, %509, %cst_64 {dimension_numbers = #tpu.dot_dimension_numbers<[1], [0], [0], [1], [0, 0, 1, 1], [], []>} : vector<2x32xbf16>, vector<32x64xbf16>, vector<2x64xf32> -> vector<2x64xf32>
    %515 = vector.broadcast %511 : vector<1x64xf32> to vector<2x64xf32>
    %516 = arith.addf %514, %515 : vector<2x64xf32>
    %cst_65 = arith.constant 0.000000e+00 : f32
    %517 = vector.broadcast %cst_65 : f32 to vector<2x64xf32>
    %518 = arith.maximumf %516, %517 : vector<2x64xf32>
    %519 = arith.truncf %518 : vector<2x64xf32> to vector<2x64xbf16>
    %cst_66 = arith.constant dense<0.000000e+00> : vector<2x64xf32>
    %520 = tpu.matmul %519, %510, %cst_66 {dimension_numbers = #tpu.dot_dimension_numbers<[1], [0], [0], [1], [0, 0, 1, 1], [], []>} : vector<2x64xbf16>, vector<64x64xbf16>, vector<2x64xf32> -> vector<2x64xf32>
    %521 = vector.broadcast %512 : vector<1x64xf32> to vector<2x64xf32>
    %522 = arith.addf %520, %521 : vector<2x64xf32>
    %cst_67 = arith.constant 0.000000e+00 : f32
    %523 = vector.broadcast %cst_67 : f32 to vector<2x64xf32>
    %524 = tpu.concatenate %522, %523 in 1 : vector<2x64xf32>, vector<2x64xf32> -> vector<2x128xf32>
    %c0_68 = arith.constant 0 : index
    %c0_69 = arith.constant 0 : index
    %525 = vector.load %arg6[%c0_68, %c0_69] : memref<2x128xf32, #tpu.memory_space<vmem>>, vector<2x128xf32>
    tpu.vector_store %arg6[%c0_68, %c0_69], %524 {strides = array<i32>} : memref<2x128xf32, #tpu.memory_space<vmem>>, vector<2x128xf32>,
    return
  }
  func.func @transform_0(%arg0: i32) -> (i32, i32) {
    %c0_i32 = arith.constant 0 : i32
    %c0_i32_0 = arith.constant 0 : i32
    %c0_i32_1 = arith.constant 0 : i32
    return %c0_i32, %c0_i32_0 : i32, i32
  }
  func.func @transform_1(%arg0: i32) -> (i32, i32) {
    %c0_i32 = arith.constant 0 : i32
    %c0_i32_0 = arith.constant 0 : i32
    %c0_i32_1 = arith.constant 0 : i32
    return %c0_i32, %c0_i32_0 : i32, i32
  }
  func.func @transform_2(%arg0: i32) -> (i32, i32) {
    %c0_i32 = arith.constant 0 : i32
    %c0_i32_0 = arith.constant 0 : i32
    %c0_i32_1 = arith.constant 0 : i32
    return %c0_i32, %c0_i32_0 : i32, i32
  }
  func.func @transform_3(%arg0: i32) -> (i32, i32, i32) {
    %c0_i32 = arith.constant 0 : i32
    %c0_i32_0 = arith.constant 0 : i32
    %c0_i32_1 = arith.constant 0 : i32
    %c0_i32_2 = arith.constant 0 : i32
    return %c0_i32, %c0_i32_0, %c0_i32_1 : i32, i32, i32
  }
  func.func @transform_4(%arg0: i32) -> (i32, i32) {
    %c0_i32 = arith.constant 0 : i32
    %c0_i32_0 = arith.constant 0 : i32
    %c0_i32_1 = arith.constant 0 : i32
    return %c0_i32, %c0_i32_0 : i32, i32
  }
  func.func @transform_5(%arg0: i32) -> (i32, i32) {
    %c0_i32 = arith.constant 0 : i32
    %c0_i32_0 = arith.constant 0 : i32
    %c0_i32_1 = arith.constant 0 : i32
    return %c0_i32, %c0_i32_0 : i32, i32
  }
}

</mosaic_0001>

<bundles_post_ra>
// kernel: s4_classifier_forward.1
= control target key start
LH: loop header
LB: loop body
LE: loop exit
PB: predicated region body
PF: predicated region fallthrough
CT: control target
= control target key end

     0   :  { %v46_v1 = vlaneseq  ;;  %vm69_vm0 = vcmask 1040384   ;;  %vm124_vm1 = vcmask 1042432   ;;  %vm165_vm2 = vcmask 1044480   ;;  %s3175_s0 = inlined_call_operand.vmem [shape: f32[32,32], index: 0, kind: input, shape index: {}]   ;;  %s3176_s1 = inlined_call_operand.vmem [shape: bf16[192,32], index: 1, kind: input, shape index: {}]   ;;  %s3177_s2 = inlined_call_operand.vmem [shape: bf16[160,64], index: 2, kind: input, shape index: {}]   ;;  %s3178_s3 = inlined_call_operand.vmem [shape: f32[2,24,32], index: 3, kind: input, shape index: {}]   ;;  %s3179_s4 = inlined_call_operand.vmem [shape: f32[4,64], index: 4, kind: input, shape index: {}]   ;;  %s3180_s5 = inlined_call_operand.hbm [shape: f32[2,128], index: 5, kind: output, shape index: {}]  }
   0x1   :  { %v2123_v0 = vld [vmem:[%s3176_s1] sm:$0xff]   ;;  %v2124_v2 = vld [vmem:[%s3176_s1 + $0x8] sm:$0xff]   ;;  %vm202_vm3 = vcmask 1046528  }
   0x2   :  { %2044 = vmatprep.subr.bf16.mxu0 %v2123_v0  ;;  %v47_v3 = vshrl.u32 %v46_v1, 7  ;;  %v26_v4 = vld [vmem:[%s3178_s3] sm:$0xff]  ;;  %v2267_v6 = vld [vmem:[%s3175_s0 + $0x8] sm:$0xff] }
   0x3   :  { %2045 = vmatpush3.bf16.msra.mxu0 %v2123_v0  ;;  %v2262_v5 = vld [vmem:[%s3175_s0] sm:$0xff]  ;;  %v2364_v63 = vld [vmem:[%s3178_s3 + $0x8] sm:$0xff] }
   0x4   :  { %2046 = vmatprep.subr.bf16.mxu0 %v2124_v2  ;;  %v2269_v7 = vsub.s32 0, %v47_v3  ;;  %v2271_v8 = vsub.s32 1, %v47_v3  ;;  %v2273_v9 = vsub.s32 2, %v47_v3  ;;  %v2275_v10 = vsub.s32 3, %v47_v3 }
   0x5   :  { %v2277_v11 = vsub.s32 4, %v47_v3  ;;  %v2279_v12 = vsub.s32 5, %v47_v3  ;;  %v2281_v13 = vsub.s32 6, %v47_v3  ;;  %v2283_v14 = vsub.s32 7, %v47_v3 }
   0x6   :  { %3203 = vst [vmem:[#allocation5_spill] sm:$0xff] %v2269_v7  ;;  %3204 = vst [vmem:[#allocation6_spill] sm:$0xff] %v2271_v8  ;;  %v2286_v15 = vrot.slane %v26_v4, %v2269_v7  ;;  %v2289_v16 = vrot.slane %v26_v4, %v2271_v8  ;;  %v2292_v17 = vrot.slane %v26_v4, %v2273_v9 }
   0x7   :  { %3205 = vst [vmem:[#allocation7_spill] sm:$0xff] %v2273_v9  ;;  %3206 = vst [vmem:[#allocation8_spill] sm:$0xff] %v2275_v10  ;;  %v2295_v18 = vrot.slane %v26_v4, %v2275_v10  ;;  %2047 = vmatpush3.bf16.msra.mxu0 %v2124_v2  ;;  %v2298_v19 = vrot.slane %v26_v4, %v2277_v11  ;;  %v2301_v20 = vrot.slane %v26_v4, %v2279_v12 }
   0x8   :  { %3207 = vst [vmem:[#allocation9_spill] sm:$0xff] %v2277_v11  ;;  %3208 = vst [vmem:[#allocation10_spill] sm:$0xff] %v2279_v12  ;;  %v2304_v21 = vrot.slane %v26_v4, %v2281_v13  ;;  %v2307_v22 = vrot.slane %v26_v4, %v2283_v14  ;;  %v50_v23 = vmul.f32 %v2286_v15, %v2262_v5  ;;  %v56_v25 = vmul.f32 0.0, %v2289_v16 }
   0x9   :  { %3209 = vst [vmem:[#allocation11_spill] sm:$0xff] %v2281_v13  ;;  %3210 = vst [vmem:[#allocation12_spill] sm:$0xff] %v2283_v14  ;;  %v51_v24 = vmul.f32 %v2286_v15, %v2267_v6  ;;  %v57_v26 = vmul.f32 %v2289_v16, %v2262_v5  ;;  %v58_v27 = vmul.f32 %v2289_v16, %v2267_v6  ;;  %v63_v28 = vmul.f32 0.0, %v2292_v17 }
   0xa   :  { %v64_v29 = vmul.f32 %v2292_v17, %v2262_v5  ;;  %v65_v30 = vmul.f32 %v2292_v17, %v2267_v6  ;;  %v97_v31 = vmul.f32 0.0, %v2295_v18  ;;  %v98_v32 = vmul.f32 %v2295_v18, %v2262_v5 }
   0xb   :  { %v99_v33 = vmul.f32 %v2295_v18, %v2267_v6  ;;  %v104_v34 = vmul.f32 0.0, %v2298_v19  ;;  %v2329_v35 = vrot.slane %v63_v28, 7  ;;  %v105_v38 = vmul.f32 %v2298_v19, %v2262_v5 }
   0xc   :  { %v71_v36 = vrot.slane %v64_v29, 7  ;;  %v73_v37 = vrot.slane %v65_v30, 7  ;;  %v106_v39 = vmul.f32 %v2298_v19, %v2267_v6  ;;  %v138_v41 = vmul.f32 0.0, %v2301_v20 }
   0xd   :  { %v2335_v40 = vrot.slane %v104_v34, 7  ;;  %v139_v42 = vmul.f32 %v2301_v20, %v2262_v5  ;;  %v2344_v45 = vadd.f32 %v2329_v35, %v56_v25  ;;  %v111_v46 = vrot.slane %v105_v38, 7 }
   0xe   :  { %v72_v43 = vsel %vm69_vm0, %v2329_v35, %v71_v36  ;;  %v74_v44 = vsel %vm69_vm0, %v71_v36, %v73_v37  ;;  %v113_v49 = vrot.slane %v106_v39, 7  ;;  %v140_v53 = vmul.f32 %v2301_v20, %v2267_v6 }
   0xf   :  { %v79_v47 = vadd.f32 %v72_v43, %v57_v26  ;;  %v80_v48 = vadd.f32 %v74_v44, %v58_v27  ;;  %v2347_v50 = vadd.f32 %v2335_v40, %v97_v31  ;;  %v3184_v51 = vrot.slane %v2344_v45, 7 }
  0x10   :  { %v112_v52 = vsel %vm69_vm0, %v2335_v40, %v111_v46  ;;  %v145_v54 = vmul.f32 0.0, %v2304_v21  ;;  %v114_v57 = vsel %vm69_vm0, %v111_v46, %v113_v49  ;;  %v146_v61 = vmul.f32 %v2304_v21, %v2262_v5 }
  0x11   :  { %v85_v55 = vrot.slane %v79_v47, 7  ;;  %v87_v56 = vrot.slane %v80_v48, 7  ;;  %v119_v58 = vadd.f32 %v112_v52, %v98_v32  ;;  %v120_v59 = vadd.f32 %v114_v57, %v99_v33 }
  0x12   :  { %v3183_v60 = vrot.slane %v2347_v50, 5  ;;  %v147_v62 = vmul.f32 %v2304_v21, %v2267_v6  ;;  %v2370_v3 = vrot.slane %v145_v54, 7  ;;  %v152_v27 = vrot.slane %v146_v61, 7 }
  0x13   :  { %v86_v0 = vsel %vm69_vm0, %v3184_v51, %v85_v55  ;;  %v88_v1 = vsel %vm69_vm0, %v85_v55, %v87_v56  ;;  %v126_v2 = vrot.slane %v119_v58, 5  ;;  %v128_v26 = vrot.slane %v120_v59, 5 }
  0x14   :  { %v91_v4 = vadd.f32 %v86_v0, %v50_v23  ;;  %v92_v25 = vadd.f32 %v88_v1, %v51_v24  ;;  %v154_v29 = vrot.slane %v147_v62, 7  ;;  %v2376_v30 = vadd.f32 %v2370_v3, %v138_v41 }
  0x15   :  { %v127_v28 = vsel %vm124_vm1, %v3183_v60, %v126_v2  ;;  %v179_v31 = vmul.f32 0.0, %v2307_v22  ;;  %v129_v32 = vsel %vm124_vm1, %v126_v2, %v128_v26  ;;  %v153_v34 = vsel %vm69_vm0, %v2370_v3, %v152_v27 }
  0x16   :  { %v132_v33 = vadd.f32 %v127_v28, %v91_v4  ;;  %v180_v23 = vmul.f32 %v2307_v22, %v2262_v5  ;;  %v133_v24 = vadd.f32 %v129_v32, %v92_v25  ;;  %v155_v36 = vsel %vm69_vm0, %v152_v27, %v154_v29 }
  0x17   :  { %v160_v37 = vadd.f32 %v153_v34, %v139_v42  ;;  %v3182_v38 = vrot.slane %v2376_v30, 3  ;;  %v161_v39 = vadd.f32 %v155_v36, %v140_v53  ;;  %v181_v41 = vmul.f32 %v2307_v22, %v2267_v6 }
  0x18   :  { %v2390_v43 = vrot.slane %v2364_v63, %v2269_v7  ;;  %v2394_v44 = vrot.slane %v2364_v63, %v2271_v8  ;;  %v2398_v47 = vrot.slane %v2364_v63, %v2273_v9  ;;  %v2402_v42 = vrot.slane %v2364_v63, %v2275_v10 }
  0x19   :  { %v167_v46 = vrot.slane %v160_v37, 3  ;;  %v2406_v48 = vrot.slane %v2364_v63, %v2277_v11 }
  0x1a   :  { %10 = vsyncpa [#allocation3], 0  ;;  %v169_v49 = vrot.slane %v161_v39, 3  ;;  %v186_v52 = vmul.f32 0.0, %v2390_v43  ;;  %v187_v53 = vmul.f32 %v2390_v43, %v2262_v5  ;;  %v216_v54 = vmul.f32 0.0, %v2394_v44 }
  0x1b   :  { %v168_v55 = vsel %vm165_vm2, %v3182_v38, %v167_v46  ;;  %v217_v56 = vmul.f32 %v2394_v44, %v2262_v5  ;;  %v222_v57 = vmul.f32 0.0, %v2398_v47  ;;  %v223_v58 = vmul.f32 %v2398_v47, %v2262_v5 }
  0x1c   :  { %v170_v59 = vsel %vm165_vm2, %v167_v46, %v169_v49  ;;  %v173_v61 = vadd.f32 %v168_v55, %v132_v33  ;;  %v2421_v62 = vrot.slane %v186_v52, 7  ;;  %v191_v0 = vrot.slane %v187_v53, 7 }
  0x1d   :  { %v174_v1 = vadd.f32 %v170_v59, %v133_v24  ;;  %v2423_v2 = vrot.slane %v222_v57, 7  ;;  %v228_v4 = vrot.slane %v223_v58, 7  ;;  %v252_v25 = vmul.f32 0.0, %v2402_v42 }
  0x1e   :  { %v192_v26 = vsel %vm69_vm0, %v2421_v62, %v191_v0  ;;  %v2429_v27 = vadd.f32 %v2421_v62, %v179_v31  ;;  %v198_v28 = vadd.f32 %v191_v0, %v181_v41  ;;  %v253_v29 = vmul.f32 %v2402_v42, %v2262_v5  ;;  %v2465_v0 = vld [vmem:[%s3178_s3 + $0x10] sm:$0xff] }
  0x1f   :  { %v197_v32 = vadd.f32 %v192_v26, %v180_v23  ;;  %v229_v33 = vsel %vm69_vm0, %v2423_v2, %v228_v4  ;;  %v233_v34 = vadd.f32 %v2423_v2, %v216_v54  ;;  %v258_v24 = vmul.f32 0.0, %v2406_v48 }
  0x20   :  { %v3181_v36 = vrot.slane %v2429_v27, 1  ;;  %v206_v37 = vrot.slane %v198_v28, 1  ;;  %v235_v39 = vadd.f32 %v229_v33, %v217_v56  ;;  %v259_v31 = vmul.f32 %v2406_v48, %v2262_v5 }
  0x21   :  { %v204_v46 = vrot.slane %v197_v32, 1  ;;  %v2440_v41 = vrot.slane %v233_v34, 7  ;;  %v2442_v49 = vrot.slane %v258_v24, 7  ;;  %v2446_v23 = vrot.slane %v2364_v63, %v2279_v12 }
  0x22   :  { %v242_v52 = vrot.slane %v235_v39, 7  ;;  %v264_v53 = vrot.slane %v259_v31, 7  ;;  %v2450_v54 = vrot.slane %v2364_v63, %v2281_v13  ;;  %v2454_v55 = vrot.slane %v2364_v63, %v2283_v14 }
  0x23   :  { %v205_v56 = vsel %vm202_vm3, %v3181_v36, %v204_v46  ;;  %v207_v57 = vsel %vm202_vm3, %v204_v46, %v206_v37  ;;  %v269_v58 = vadd.f32 %v2442_v49, %v252_v25  ;;  %v288_v59 = vmul.f32 0.0, %v2446_v23 }
  0x24   :  { %v210_v4 = vadd.f32 %v205_v56, %v173_v61  ;;  %v211_v26 = vadd.f32 %v207_v57, %v174_v1  ;;  %v243_v63 = vsel %vm69_vm0, %v2440_v41, %v242_v52  ;;  %v265_v28 = vsel %vm69_vm0, %v2442_v49, %v264_v53 }
  0x25   :  { %v271_v32 = vadd.f32 %v265_v28, %v253_v29  ;;  %v2471_v33 = vrot.slane %v269_v58, 5  ;;  %v289_v25 = vmul.f32 %v2446_v23, %v2262_v5  ;;  %v294_v34 = vmul.f32 0.0, %v2450_v54  ;;  %v2504_v28 = vld [vmem:[%s3175_s0 + $0x18] sm:$0xff] }
  0x26   :  { %v246_v24 = vadd.f32 %v2440_v41, %v210_v4  ;;  %v247_v37 = vadd.f32 %v243_v63, %v211_v26  ;;  %v295_v61 = vmul.f32 %v2450_v54, %v2262_v5  ;;  %v324_v1 = vmul.f32 0.0, %v2454_v55  ;;  %v2499_v63 = vld [vmem:[%s3175_s0 + $0x10] sm:$0xff] }
  0x27   :  { %v278_v39 = vrot.slane %v271_v32, 5  ;;  %v2480_v31 = vrot.slane %v294_v34, 7  ;;  %v325_v29 = vmul.f32 %v2454_v55, %v2262_v5  ;;  %v2486_v46 = vrot.slane %v2465_v0, %v2269_v7 }
  0x28   :  { %v282_v52 = vadd.f32 %v2471_v33, %v246_v24  ;;  %v300_v53 = vrot.slane %v295_v61, 7  ;;  %v2489_v56 = vrot.slane %v324_v1, 1  ;;  %v336_v24 = vmul.f32 %v2286_v15, %v2499_v63 }
  0x29   :  { %v279_v57 = vsel %vm124_vm1, %v2471_v33, %v278_v39  ;;  %v305_v58 = vadd.f32 %v2480_v31, %v288_v59  ;;  %v330_v4 = vrot.slane %v325_v29, 1  ;;  %v480_v26 = vmul.f32 %v2486_v46, %v2262_v5 }
  0x2a   :  { %v283_v32 = vadd.f32 %v279_v57, %v247_v37  ;;  %v301_v34 = vsel %vm69_vm0, %v2480_v31, %v300_v53  ;;  %v481_v59 = vmul.f32 %v2486_v46, %v2267_v6  ;;  %v337_v29 = vmul.f32 %v2286_v15, %v2504_v28 }
  0x2b   :  { %v307_v61 = vadd.f32 %v301_v34, %v289_v25  ;;  %v2512_v1 = vrot.slane %v305_v58, 3  ;;  %v331_v39 = vsel %vm202_vm3, %v2489_v56, %v330_v4  ;;  %v338_v37 = vmul.f32 %v2289_v16, %v2499_v63 }
  0x2c   :  { %v339_v53 = vmul.f32 %v2289_v16, %v2504_v28  ;;  %v340_v57 = vmul.f32 %v2292_v17, %v2499_v63  ;;  %v341_v25 = vmul.f32 %v2292_v17, %v2504_v28  ;;  %v362_v4 = vmul.f32 %v2295_v18, %v2499_v63 }
  0x2d   :  { %v314_v58 = vrot.slane %v307_v61, 3  ;;  %v318_v34 = vadd.f32 %v2512_v1, %v282_v52  ;;  %v363_v15 = vmul.f32 %v2295_v18, %v2504_v28  ;;  %v364_v16 = vmul.f32 %v2298_v19, %v2499_v63 }
  0x2e   :  { %v344_v36 = vrot.slane %v340_v57, 7  ;;  %v346_v38 = vrot.slane %v341_v25, 7  ;;  %v365_v60 = vmul.f32 %v2298_v19, %v2504_v28  ;;  %v386_v52 = vmul.f32 %v2301_v20, %v2499_v63 }
  0x2f   :  { %v315_v17 = vsel %vm165_vm2, %v2512_v1, %v314_v58  ;;  %v334_v61 = vadd.f32 %v2489_v56, %v318_v34  ;;  %v387_v51 = vmul.f32 %v2301_v20, %v2504_v28  ;;  %v368_v12 = vrot.slane %v364_v16, 7 }
  0x30   :  { %v319_v18 = vadd.f32 %v315_v17, %v283_v32  ;;  %v345_v57 = vsel %vm69_vm0, %v2329_v35, %v344_v36  ;;  %v347_v25 = vsel %vm69_vm0, %v344_v36, %v346_v38  ;;  %v370_v58 = vrot.slane %v365_v60, 7 }
  0x31   :  { %v2545_v14 = vadd.f32 %v480_v26, %v334_v61  ;;  %v350_v19 = vadd.f32 %v345_v57, %v338_v37  ;;  %v351_v7 = vadd.f32 %v347_v25, %v339_v53  ;;  %v369_v34 = vsel %vm69_vm0, %v2335_v40, %v368_v12 }
  0x32   :  { %v335_v13 = vadd.f32 %v331_v39, %v319_v18  ;;  %v388_v11 = vmul.f32 %v2304_v21, %v2499_v63  ;;  %v389_v20 = vmul.f32 %v2304_v21, %v2504_v28  ;;  %v371_v26 = vsel %vm69_vm0, %v368_v12, %v370_v58 }
  0x33   :  { %v488_v35 = vmul.f32 %v2545_v14, %v2545_v14  ;;  %v354_v38 = vrot.slane %v350_v19, 7  ;;  %v356_v36 = vrot.slane %v351_v7, 7  ;;  %v374_v60 = vadd.f32 %v369_v34, %v362_v4 }
  0x34   :  { %v2556_v32 = vadd.f32 %v481_v59, %v335_v13  ;;  %v375_v39 = vadd.f32 %v371_v26, %v363_v15  ;;  %v392_v37 = vrot.slane %v388_v11, 7  ;;  %v3211_v53 = vrot.slane %v2344_v45, 7 }
  0x35   :  { %v492_v40 = vmul.f32 %v488_v35, %v2545_v14  ;;  %v357_v21 = vsel %vm69_vm0, %v354_v38, %v356_v36  ;;  %v394_v17 = vrot.slane %v389_v20, 7  ;;  %v378_v12 = vrot.slane %v374_v60, 5 }
  0x36   :  { %v355_v16 = vsel %vm69_vm0, %v3211_v53, %v354_v38  ;;  %v489_v61 = vmul.f32 %v2556_v32, %v2556_v32  ;;  %v361_v18 = vadd.f32 %v357_v21, %v337_v29  ;;  %v380_v59 = vrot.slane %v375_v39, 5 }
  0x37   :  { %v360_v7 = vadd.f32 %v355_v16, %v336_v24  ;;  %v496_v13 = vmul.f32 0.044715, %v492_v40  ;;  %v393_v11 = vsel %vm69_vm0, %v2370_v3, %v392_v37  ;;  %v395_v4 = vsel %vm69_vm0, %v392_v37, %v394_v17 }
  0x38   :  { %v493_v45 = vmul.f32 %v489_v61, %v2556_v32  ;;  %v3212_v15 = vrot.slane %v2347_v50, 5  ;;  %v398_v25 = vadd.f32 %v393_v11, %v386_v52  ;;  %v399_v19 = vadd.f32 %v395_v4, %v387_v51 }
  0x39   :  { %v500_v58 = vadd.f32 %v496_v13, %v2545_v14  ;;  %v381_v24 = vsel %vm124_vm1, %v378_v12, %v380_v59  ;;  %v410_v3 = vmul.f32 %v2307_v22, %v2499_v63  ;;  %v411_v50 = vmul.f32 %v2307_v22, %v2504_v28 }
  0x3a   :  { %v379_v57 = vsel %vm124_vm1, %v3212_v15, %v378_v12  ;;  %v497_v34 = vmul.f32 0.044715, %v493_v45  ;;  %v402_v20 = vrot.slane %v398_v25, 3  ;;  %v404_v35 = vrot.slane %v399_v19, 3 }
  0x3b   :  { %v384_v29 = vadd.f32 %v379_v57, %v360_v7  ;;  %v504_v38 = vmul.f32 0.7978846, %v500_v58  ;;  %v385_v36 = vadd.f32 %v381_v24, %v361_v18  ;;  %v412_v52 = vmul.f32 %v2390_v43, %v2499_v63 }
  0x3c   :  { %v501_v51 = vadd.f32 %v497_v34, %v2556_v32  ;;  %v3213_v26 = vrot.slane %v2376_v30, 3  ;;  %v430_v39 = vmul.f32 %v2394_v44, %v2499_v63  ;;  %v431_v37 = vmul.f32 %v2398_v47, %v2499_v63 }
  0x3d   :  { %2145 = vtanh.f32 %v504_v38  ;;  %v405_v40 = vsel %vm165_vm2, %v402_v20, %v404_v35  ;;  %v414_v22 = vrot.slane %v412_v52, 7  ;;  %v443_v43 = vmul.f32 %v2402_v42, %v2499_v63 }
  0x3e   :  { %v403_v60 = vsel %vm165_vm2, %v3213_v26, %v402_v20  ;;  %v505_v16 = vmul.f32 0.7978846, %v501_v51  ;;  %v433_v21 = vrot.slane %v431_v37, 7  ;;  %v444_v30 = vmul.f32 %v2406_v48, %v2499_v63 }
  0x3f   :  { %v408_v53 = vadd.f32 %v403_v60, %v384_v29  ;;  %v415_v17 = vsel %vm69_vm0, %v2421_v62, %v414_v22  ;;  %v419_v44 = vadd.f32 %v414_v22, %v411_v50  ;;  %v456_v47 = vmul.f32 %v2446_v23, %v2499_v63 }
  0x40   :  { %v457_v61 = vmul.f32 %v2450_v54, %v2499_v63  ;;  %2147 = vtanh.f32 %v505_v16  ;;  %v418_v7 = vadd.f32 %v415_v17, %v410_v3  ;;  %v434_v18 = vsel %vm69_vm0, %v2423_v2, %v433_v21 }
  0x41   :  { %v446_v12 = vrot.slane %v444_v30, 7  ;;  %v409_v42 = vadd.f32 %v405_v40, %v385_v36  ;;  %v424_v13 = vrot.slane %v419_v44, 1  ;;  %v436_v59 = vadd.f32 %v434_v18, %v430_v39 }
  0x42   :  { %v459_v48 = vrot.slane %v457_v61, 7  ;;  %v422_v11 = vrot.slane %v418_v7, 1  ;;  %v469_v23 = vmul.f32 %v2454_v55, %v2499_v63  ;;  %v3214_v15 = vrot.slane %v2429_v27, 1 }
  0x43   :  { %v447_v62 = vsel %vm69_vm0, %v2442_v49, %v446_v12  ;;  %v438_v4 = vrot.slane %v436_v59, 7  ;;  %v482_v26 = vmul.f32 %v2486_v46, %v2499_v63  ;;  %v483_v37 = vmul.f32 %v2486_v46, %v2504_v28 }
  0x44   :  { %v449_v45 = vadd.f32 %v447_v62, %v443_v43  ;;  %v460_v54 = vsel %vm69_vm0, %v2480_v31, %v459_v48  ;;  %v423_v2 = vsel %vm202_vm3, %v3214_v15, %v422_v11  ;;  %v425_v57 = vsel %vm202_vm3, %v422_v11, %v424_v13 }
  0x45   :  { %v462_v25 = vadd.f32 %v460_v54, %v456_v47  ;;  %v428_v19 = vadd.f32 %v423_v2, %v408_v53  ;;  %v429_v58 = vadd.f32 %v425_v57, %v409_v42  ;;  %v439_v49 = vsel %vm69_vm0, %v2440_v41, %v438_v4 }
  0x46   :  { %v451_v24 = vrot.slane %v449_v45, 5  ;;  %v471_v55 = vrot.slane %v469_v23, 1  ;;  %vm542_vm4 = vcmask 261120   ;;  %v529_v4 = vrot.slane %v2465_v0, %v2271_v8 }
  0x47   :  { %v464_v29 = vrot.slane %v462_v25, 3  ;;  %v2146_v34 = vpop.eup %2145  ;;  %v441_v20 = vadd.f32 %v428_v19, %v2440_v41  ;;  %v442_v35 = vadd.f32 %v439_v49, %v429_v58  ;;  %vm778_vm5 = vcmask 523264  }
  0x48   :  { %v452_v27 = vsel %vm124_vm1, %v2471_v33, %v451_v24  ;;  %v512_v31 = vadd.f32 1.0, %v2146_v34  ;;  %v472_v51 = vsel %vm202_vm3, %v2489_v56, %v471_v55  ;;  %vm2218_vm6 = vmmov 0  }
  0x49   :  { %v465_v3 = vsel %vm165_vm2, %v2512_v1, %v464_v29  ;;  %v454_v38 = vadd.f32 %v441_v20, %v2471_v33  ;;  %v455_v36 = vadd.f32 %v452_v27, %v442_v35 }
  0x4a   :  { %v2148_v50 = vpop.eup %2147  ;;  %v516_v52 = vmul.f32 0.5, %v512_v31 }
  0x4b   :  { %v513_v41 = vadd.f32 1.0, %v2148_v50  ;;  %v467_v60 = vadd.f32 %v454_v38, %v2512_v1  ;;  %v468_v39 = vadd.f32 %v465_v3, %v455_v36 }
  0x4c   :  { %v520_v53 = vmul.f32 %v516_v52, %v2545_v14 }
  0x4d   :  { %v517_v40 = vmul.f32 0.5, %v513_v41  ;;  %v474_v33 = vadd.f32 %v467_v60, %v2489_v56  ;;  %v475_v22 = vadd.f32 %v472_v51, %v468_v39 }
  0x4f   :  { %v521_v16 = vmul.f32 %v517_v40, %v2556_v32  ;;  %v486_v21 = vadd.f32 %v482_v26, %v474_v33  ;;  %v487_v43 = vadd.f32 %v483_v37, %v475_v22 }
  0x51   :  { %v524_v30 = vpack.c.bf16 %v521_v16, %v520_v53  ;;  %v490_v17 = vmul.f32 %v486_v21, %v486_v21  ;;  %v491_v44 = vmul.f32 %v487_v43, %v487_v43  ;;  %v2125_v16 = vld [vmem:[%s3177_s2] sm:$0xff]  }
  0x52   :  { %2052 = vmatprep.subr.bf16.mxu1 %v2125_v16 }
  0x53   :  { %2048 = vmatprep.mubr.msk.bf16.mxu0 %vm542_vm4, %v524_v30  ;;  %v494_v1 = vmul.f32 %v490_v17, %v486_v21  ;;  %v495_v47 = vmul.f32 %v491_v44, %v487_v43  ;;  %2053 = vmatpush3.bf16.msra.mxu1 %v2125_v16  ;;  %v2128_v30 = vld [vmem:[%s3176_s1 + $0x18] sm:$0xff]  }
  0x55   :  { %v498_v61 = vmul.f32 0.044715, %v494_v1  ;;  %v499_v46 = vmul.f32 0.044715, %v495_v47 }
  0x57   :  { %v502_v7 = vadd.f32 %v498_v61, %v486_v21  ;;  %v503_v18 = vadd.f32 %v499_v46, %v487_v43 }
  0x59   :  { %v506_v14 = vmul.f32 0.7978846, %v502_v7  ;;  %v507_v12 = vmul.f32 0.7978846, %v503_v18 }
  0x5b   :  { %2149 = vtanh.f32 %v506_v14 }
  0x5c   :  { %2151 = vtanh.f32 %v507_v12 }
  0x65   :  { %v2150_v56 = vpop.eup %2149 }
  0x66   :  { %v2152_v32 = vpop.eup %2151  ;;  %v514_v42 = vadd.f32 1.0, %v2150_v56 }
  0x67   :  { %v515_v13 = vadd.f32 1.0, %v2152_v32 }
  0x68   :  { %v518_v59 = vmul.f32 0.5, %v514_v42 }
  0x69   :  { %v519_v48 = vmul.f32 0.5, %v515_v13 }
  0x6a   :  { %v522_v11 = vmul.f32 %v518_v59, %v486_v21  ;;  %v2126_v21 = vld [vmem:[%s3177_s2 + $0x8] sm:$0xff]   ;;  %v658_v59 = vrot.slane %v2465_v0, %v2273_v9 }
  0x6b   :  { %v523_v62 = vmul.f32 %v519_v48, %v487_v43  ;;  %2054 = vmatprep.subr.bf16.mxu1 %v2126_v21  ;;  %v2127_v43 = vld [vmem:[%s3176_s1 + $0x10] sm:$0xff]  }
  0x6c   :  { %2055 = vmatpush3.bf16.msra.mxu1 %v2126_v21  ;;  %2060 = vmatprep.subr.bf16.mxu0 %v2127_v43 }
  0x6d   :  { %v525_v23 = vpack.c.bf16 %v523_v62, %v522_v11 }
  0x6f   :  { %2049 = vmatmul.mubr.msk.bf16.vlgmr.msra.gmra.mrb[0].mxu0 %vm542_vm4, %v525_v23 }
  0x70   :  { %2061 = vmatpush3.bf16.msra.mxu0 %v2127_v43 }
  0x71   :  { %2062 = vmatprep.subr.bf16.mxu0 %v2128_v30 }
  0x74   :  { %2063 = vmatpush3.bf16.msra.mxu0 %v2128_v30 }
 0x142   :  { %v2050_v45 = vpop.f32.mrb[0].mxu0 }
 0x143   :  { %v592_v54 = vadd.f32 %v2050_v45, %v529_v4  ;;  %v583_v15 = vpop.f32.mrb[1].mxu0 }
 0x144   :  { %v584_v2 = vadd.f32 %v583_v15, %v529_v4  ;;  %v2051_v57 = vpop.f32.mrb[2].mxu0 }
 0x145   :  { %v595_v25 = vadd.f32 %v2051_v57, %v529_v4  ;;  %v586_v19 = vpop.f32.mrb[3].mxu0  ;;  %v600_v58 = vadd.f32 %v592_v54, %v2499_v63 }
 0x146   :  { %v587_v49 = vadd.f32 %v586_v19, %v529_v4  ;;  %v598_v24 = vadd.f32 %v584_v2, %v2262_v5  ;;  %v666_v4 = vrot.slane %v2465_v0, %v2275_v10 }
 0x147   :  { %v608_v29 = vsel %vm542_vm4, %v600_v58, 0.0  ;;  %v601_v55 = vadd.f32 %v595_v25, %v2504_v28 }
 0x148   :  { %609 = vadd.xlane.f32.xlu1 %v608_v29  ;;  %v602_v34 = vsel %vm542_vm4, %v598_v24, 0.0  ;;  %v599_v20 = vadd.f32 %v587_v49, %v2267_v6 }
 0x149   :  { %603 = vadd.xlane.f32.xlu0 %v602_v34  ;;  %v611_v35 = vsel %vm542_vm4, %v601_v55, 0.0  ;;  %v2129_v34 = vld [vmem:[%s3176_s1 + $0x20] sm:$0xff]  }
 0x14a   :  { %v605_v27 = vsel %vm542_vm4, %v599_v20, 0.0  ;;  %2064 = vmatprep.subr.bf16.mxu0 %v2129_v34 }
 0x14b   :  { %2065 = vmatpush3.bf16.msra.mxu0 %v2129_v34 }
 0x14c   :  { %612 = vadd.xlane.f32.xlu1 %v611_v35  ;;  %v1969_v35 = vld [vmem:[%s3179_s4] ss:$0 sm:$0xff] }
 0x14d   :  { %606 = vadd.xlane.f32.xlu0 %v605_v27 }
 0x1d5   :  { %v610_v63 = vpop.xlane.xlu1 %609 }
 0x1d6   :  { %v617_v31 = vmul.f32 0.03125, %v610_v63  ;;  %v604_v3 = vpop.xlane.xlu0 %603 }
 0x1d7   :  { %v615_v5 = vmul.f32 0.03125, %v604_v3 }
 0x1d8   :  { %v621_v38 = vsub.f32 %v600_v58, %v617_v31 }
 0x1d9   :  { %v619_v36 = vsub.f32 %v598_v24, %v615_v5  ;;  %v613_v50 = vpop.xlane.xlu1 %612 }
 0x1da   :  { %v618_v28 = vmul.f32 0.03125, %v613_v50  ;;  %v607_v52 = vpop.xlane.xlu0 %606  ;;  %v625_v39 = vmul.f32 %v621_v38, %v621_v38 }
 0x1db   :  { %v616_v51 = vmul.f32 0.03125, %v607_v52  ;;  %v623_v26 = vmul.f32 %v619_v36, %v619_v36 }
 0x1dc   :  { %v622_v41 = vsub.f32 %v601_v55, %v618_v28  ;;  %v633_v40 = vsel %vm542_vm4, %v625_v39, 0.0 }
 0x1dd   :  { %v620_v6 = vsub.f32 %v599_v20, %v616_v51  ;;  %v627_v60 = vsel %vm542_vm4, %v623_v26, 0.0  ;;  %v2130_v20 = vld [vmem:[%s3176_s1 + $0x28] sm:$0xff]  }
 0x1de   :  { %628 = vadd.xlane.f32.xlu0 %v627_v60  ;;  %v626_v33 = vmul.f32 %v622_v41, %v622_v41  ;;  %2066 = vmatprep.subr.bf16.mxu0 %v2130_v20  ;;  %v3215_v60 = vld [vmem:[#allocation9_spill] sm:$0xff] }
 0x1df   :  { %v624_v37 = vmul.f32 %v620_v6, %v620_v6  ;;  %2067 = vmatpush3.bf16.msra.mxu0 %v2130_v20  ;;  %v753_v39 = vrot.slane %v2465_v0, %v3215_v60  ;;  %v1981_v20 = vld [vmem:[%s3178_s3 + $0x20] sm:$0xff] }
 0x1e0   :  { %v636_v22 = vsel %vm542_vm4, %v626_v33, 0.0 }
 0x1e1   :  { %v630_v53 = vsel %vm542_vm4, %v624_v37, 0.0 }
 0x1e2   :  { %634 = vadd.xlane.f32.xlu0 %v633_v40  ;;  %631 = vadd.xlane.f32.xlu1 %v630_v53 }
 0x1e6   :  { %637 = vadd.xlane.f32.xlu1 %v636_v22 }
 0x26b   :  { %v629_v17 = vpop.xlane.xlu0 %628 }
 0x26c   :  { %v639_v44 = vmul.f32 0.03125, %v629_v17 }
 0x26e   :  { %v643_v1 = vadd.f32 1e-05, %v639_v44 }
 0x26f   :  { %v632_v47 = vpop.xlane.xlu1 %631  ;;  %v635_v61 = vpop.xlane.xlu0 %634 }
 0x270   :  { %2153 = vrsqrt.f32 %v643_v1  ;;  %v640_v46 = vmul.f32 0.03125, %v632_v47  ;;  %v641_v7 = vmul.f32 0.03125, %v635_v61 }
 0x272   :  { %v644_v18 = vadd.f32 1e-05, %v640_v46  ;;  %v645_v14 = vadd.f32 1e-05, %v641_v7 }
 0x273   :  { %v638_v12 = vpop.xlane.xlu1 %637 }
 0x274   :  { %2155 = vrsqrt.f32 %v644_v18  ;;  %v642_v56 = vmul.f32 0.03125, %v638_v12 }
 0x275   :  { %2157 = vrsqrt.f32 %v645_v14 }
 0x276   :  { %v646_v32 = vadd.f32 1e-05, %v642_v56 }
 0x278   :  { %2159 = vrsqrt.f32 %v646_v32 }
 0x27a   :  { %v2154_v42 = vpop.eup %2153 }
 0x27b   :  { %v651_v13 = vmul.f32 %v2154_v42, %v619_v36 }
 0x27d   :  { %v659_v23 = vmul.f32 %v658_v59, %v651_v13 }
 0x27e   :  { %v2156_v48 = vpop.eup %2155 }
 0x27f   :  { %v2158_v11 = vpop.eup %2157  ;;  %v652_v62 = vmul.f32 %v2156_v48, %v620_v6  ;;  %v667_v57 = vadd.f32 %v666_v4, %v659_v23 }
 0x280   :  { %v653_v45 = vmul.f32 %v2158_v11, %v621_v38 }
 0x281   :  { %v660_v54 = vmul.f32 %v658_v59, %v652_v62 }
 0x282   :  { %v2160_v15 = vpop.eup %2159  ;;  %v661_v19 = vmul.f32 %v658_v59, %v653_v45 }
 0x283   :  { %v654_v2 = vmul.f32 %v2160_v15, %v622_v41  ;;  %v668_v25 = vadd.f32 %v666_v4, %v660_v54 }
 0x284   :  { %v669_v24 = vadd.f32 %v666_v4, %v661_v19 }
 0x285   :  { %v671_v58 = vpack.c.bf16 %v668_v25, %v667_v57  ;;  %v662_v49 = vmul.f32 %v658_v59, %v654_v2 }
 0x287   :  { %2056 = vmatprep.mubr.msk.bf16.mxu1 %vm542_vm4, %v671_v58  ;;  %v670_v29 = vadd.f32 %v666_v4, %v662_v49  ;;  %v2131_v58 = vld [vmem:[%s3176_s1 + $0x30] sm:$0xff]   ;;  %v2132_v49 = vld [vmem:[%s3176_s1 + $0x38] sm:$0xff]  }
 0x288   :  { %2072 = vmatprep.subr.bf16.mxu1 %v2131_v58 }
 0x289   :  { %v672_v55 = vpack.c.bf16 %v670_v29, %v669_v24 }
 0x28b   :  { %2057 = vmatmul.mubr.msk.bf16.vlgmr.msra.gmra.mrb[0].mxu1 %vm542_vm4, %v672_v55 }
 0x28c   :  { %2073 = vmatpush3.bf16.msra.mxu1 %v2131_v58 }
 0x28d   :  { %2074 = vmatprep.subr.bf16.mxu1 %v2132_v49 }
 0x290   :  { %2075 = vmatpush3.bf16.msra.mxu1 %v2132_v49 }
 0x35e   :  { %v2058_v27 = vpop.f32.mrb[0].mxu1 }
 0x35f   :  { %v738_v63 = vadd.f32 %v2058_v27, %v1969_v35  ;;  %v729_v31 = vpop.f32.mrb[1].mxu1 }
 0x360   :  { %v730_v3 = vadd.f32 %v1969_v35, %v729_v31  ;;  %v2059_v5 = vpop.f32.mrb[2].mxu1 }
 0x361   :  { %v741_v38 = vadd.f32 %v2059_v5, %v1969_v35  ;;  %v732_v36 = vpop.f32.mrb[3].mxu1  ;;  %v746_v28 = vmax.f32 %v738_v63, 0.0 }
 0x362   :  { %v733_v50 = vadd.f32 %v1969_v35, %v732_v36  ;;  %v744_v51 = vmax.f32 %v730_v3, 0.0  ;;  %v3216_v3 = vld [vmem:[#allocation11_spill] sm:$0xff] }
 0x363   :  { %v747_v52 = vmax.f32 %v741_v38, 0.0 }
 0x364   :  { %v745_v26 = vmax.f32 %v733_v50, 0.0  ;;  %v3217_v50 = vld [vmem:[#allocation5_spill] sm:$0xff] }
 0x365   :  { %v749_v41 = vpack.c.bf16 %v747_v52, %v746_v28  ;;  %v2728_v28 = vrot.slane %v1981_v20, %v3217_v50 }
 0x366   :  { %v748_v6 = vpack.c.bf16 %v745_v26, %v744_v51  ;;  %v2731_v26 = vrot.slane %v1981_v20, %v2273_v9 }
 0x368   :  { %2068 = vmatprep.mubr.msk.bf16.mxu0 %vm778_vm5, %v748_v6 }
 0x369   :  { %2069 = vmatmul.mubr.msk.bf16.vlgmr.msra.gmra.mrb[4].mxu0 %vm778_vm5, %v749_v41  ;;  %v3218_v41 = vld [vmem:[#allocation12_spill] sm:$0xff] }
 0x43c   :  { %v2070_v37 = vpop.f32.mrb[4].mxu0 }
 0x43d   :  { %v819_v40 = vpop.f32.mrb[5].mxu0  ;;  %v828_v53 = vadd.f32 %v2070_v37, %v753_v39 }
 0x43e   :  { %v820_v33 = vadd.f32 %v819_v40, %v753_v39  ;;  %v2071_v22 = vpop.f32.mrb[6].mxu0 }
 0x43f   :  { %v822_v16 = vpop.f32.mrb[7].mxu0  ;;  %v831_v21 = vadd.f32 %v2071_v22, %v753_v39  ;;  %v836_v1 = vadd.f32 %v828_v53, %v669_v24  ;;  %v2709_v24 = vld [vmem:[%s3178_s3 + $0x18] sm:$0xff]  ;;  %v2743_v53 = vrot.slane %v1981_v20, %v3215_v60 }
 0x440   :  { %v823_v43 = vadd.f32 %v822_v16, %v753_v39  ;;  %v834_v30 = vadd.f32 %v820_v33, %v667_v57  ;;  %v2713_v55 = vrot.slane %v2709_v24, %v2273_v9  ;;  %v2720_v27 = vrot.slane %v2709_v24, %v3215_v60 }
 0x441   :  { %v837_v61 = vadd.f32 %v831_v21, %v670_v29  ;;  %v844_v46 = vsel %vm542_vm4, %v836_v1, 0.0  ;;  %v2724_v5 = vrot.slane %v2709_v24, %v3216_v3  ;;  %v2735_v6 = vrot.slane %v2709_v24, %v3218_v41 }
 0x442   :  { %v838_v17 = vsel %vm542_vm4, %v834_v30, 0.0  ;;  %v835_v44 = vadd.f32 %v823_v43, %v668_v25  ;;  %v944_v36 = vmul.f32 0.0, %v2713_v55  ;;  %v2739_v37 = vrot.slane %v2709_v24, %v2271_v8 }
 0x443   :  { %839 = vadd.xlane.f32.xlu0 %v838_v17  ;;  %v847_v7 = vsel %vm542_vm4, %v837_v61, 0.0  ;;  %v984_v40 = vmul.f32 0.0, %v2720_v27  ;;  %v1024_v16 = vmul.f32 0.0, %v2724_v5  ;;  %v2750_v43 = vrot.slane %v2709_v24, %v2275_v10 }
 0x444   :  { %v841_v47 = vsel %vm542_vm4, %v835_v44, 0.0  ;;  %v2746_v21 = vrot.slane %v944_v36, 7  ;;  %v2811_v36 = vld [vmem:[%s3178_s3 + $0x28] sm:$0xff] }
 0x445   :  { %842 = vadd.xlane.f32.xlu1 %v841_v47  ;;  %v1099_v47 = vmul.f32 0.0, %v2731_v26  ;;  %3220 = vst [vmem:[#allocation5_spill] sm:$0xff] %v2811_v36 }
 0x447   :  { %845 = vadd.xlane.f32.xlu0 %v844_v46  ;;  %v937_v46 = vmul.f32 0.0, %v2739_v37 }
 0x449   :  { %848 = vadd.xlane.f32.xlu1 %v847_v7  ;;  %v977_v7 = vmul.f32 0.0, %v2750_v43  ;;  %v2791_v58 = vadd.f32 %v2746_v21, %v937_v46 }
 0x4d0   :  { %v840_v18 = vpop.xlane.xlu0 %839 }
 0x4d1   :  { %v850_v14 = vmul.f32 0.03125, %v840_v18  ;;  %v2763_v18 = vrot.slane %v984_v40, 7 }
 0x4d2   :  { %v843_v12 = vpop.xlane.xlu1 %842 }
 0x4d3   :  { %v2680_v56 = vsub.f32 %v834_v30, %v850_v14  ;;  %v851_v32 = vmul.f32 0.03125, %v843_v12  ;;  %v3219_v30 = vld [vmem:[#allocation10_spill] sm:$0xff]  ;;  %v1135_v14 = vmul.f32 0.0, %v2743_v53  ;;  %v2794_v49 = vadd.f32 %v2763_v18, %v977_v7 }
 0x4d4   :  { %v846_v42 = vpop.xlane.xlu0 %845  ;;  %v2754_v17 = vrot.slane %v2709_v24, %v3219_v30 }
 0x4d5   :  { %v2682_v13 = vsub.f32 %v835_v44, %v851_v32  ;;  %v852_v59 = vmul.f32 0.03125, %v846_v42  ;;  %v858_v48 = vmul.f32 %v2680_v56, %v2680_v56  ;;  %v1064_v44 = vmul.f32 0.0, %v2728_v28 }
 0x4d6   :  { %v849_v11 = vpop.xlane.xlu1 %848  ;;  %v1017_v12 = vmul.f32 0.0, %v2754_v17  ;;  %v2767_v32 = vrot.slane %v1024_v16, 7  ;;  %v2770_v42 = vrot.slane %v1981_v20, %v2271_v8 }
 0x4d7   :  { %v2686_v62 = vsub.f32 %v836_v1, %v852_v59  ;;  %v853_v23 = vmul.f32 0.03125, %v849_v11  ;;  %v862_v4 = vsel %vm542_vm4, %v858_v48, 0.0  ;;  %v859_v45 = vmul.f32 %v2682_v13, %v2682_v13 }
 0x4d8   :  { %863 = vadd.xlane.f32.xlu0 %v862_v4  ;;  %v1057_v59 = vmul.f32 0.0, %v2735_v6  ;;  %v2773_v48 = vrot.slane %v1064_v44, 7  ;;  %v2776_v11 = vrot.slane %v1981_v20, %v2275_v10  ;;  %v2779_v4 = vrot.slane %v1099_v47, 7 }
 0x4d9   :  { %v2691_v54 = vsub.f32 %v837_v61, %v853_v23  ;;  %v865_v15 = vsel %vm542_vm4, %v859_v45, 0.0  ;;  %v860_v2 = vmul.f32 %v2686_v62, %v2686_v62  ;;  %v2759_v61 = vrot.slane %v1981_v20, %v3216_v3 }
 0x4da   :  { %866 = vadd.xlane.f32.xlu1 %v865_v15  ;;  %v1093_v23 = vmul.f32 0.0, %v2770_v42  ;;  %v2783_v15 = vrot.slane %v1981_v20, %v3218_v41 }
 0x4db   :  { %v868_v57 = vsel %vm542_vm4, %v860_v2, 0.0  ;;  %v861_v25 = vmul.f32 %v2691_v54, %v2691_v54  ;;  %v1171_v45 = vmul.f32 0.0, %v2759_v61  ;;  %v893_v2 = vrot.slane %v2465_v0, %v3219_v30 }
 0x4dc   :  { %869 = vadd.xlane.f32.xlu0 %v868_v57  ;;  %v1129_v57 = vmul.f32 0.0, %v2776_v11  ;;  %v1201_v41 = vmul.f32 0.0, %v2783_v15 }
 0x4dd   :  { %v871_v19 = vsel %vm542_vm4, %v861_v25, 0.0  ;;  %v2788_v25 = vrot.slane %v1135_v14, 7 }
 0x4de   :  { %872 = vadd.xlane.f32.xlu1 %v871_v19 }
 0x565   :  { %v864_v29 = vpop.xlane.xlu0 %863 }
 0x566   :  { %v874_v34 = vmul.f32 0.03125, %v864_v29  ;;  %v2797_v29 = vadd.f32 %v2767_v32, %v1017_v12 }
 0x567   :  { %v867_v35 = vpop.xlane.xlu1 %866 }
 0x568   :  { %v878_v63 = vadd.f32 1e-05, %v874_v34  ;;  %v875_v31 = vmul.f32 0.03125, %v867_v35  ;;  %v2800_v34 = vrot.slane %v1981_v20, %v3219_v30  ;;  %v901_v35 = vrot.slane %v2465_v0, %v3216_v3 }
 0x569   :  { %v870_v38 = vpop.xlane.xlu0 %869  ;;  %v2815_v20 = vrot.slane %v1171_v45, 7 }
 0x56a   :  { %2161 = vrsqrt.f32 %v878_v63  ;;  %v879_v52 = vadd.f32 1e-05, %v875_v31  ;;  %v876_v51 = vmul.f32 0.03125, %v870_v38  ;;  %v2806_v31 = vadd.f32 %v2773_v48, %v1057_v59 }
 0x56b   :  { %v873_v39 = vpop.xlane.xlu1 %872  ;;  %v2840_v59 = vrot.slane %v1201_v41, 1 }
 0x56c   :  { %2163 = vrsqrt.f32 %v879_v52  ;;  %v880_v33 = vadd.f32 1e-05, %v876_v51  ;;  %v877_v22 = vmul.f32 0.03125, %v873_v39  ;;  %v1110_v52 = vadd.f32 %v2779_v4, %v1093_v23 }
 0x56d   :  { %v1165_v51 = vmul.f32 0.0, %v2800_v34  ;;  %v1146_v39 = vadd.f32 %v2788_v25, %v1129_v57 }
 0x56e   :  { %2165 = vrsqrt.f32 %v880_v33  ;;  %v881_v1 = vadd.f32 1e-05, %v877_v22  ;;  %v2822_v33 = vrot.slane %v2709_v24, %v3217_v50  ;;  %v2835_v24 = vrot.slane %v1110_v52, 7 }
 0x56f   :  { %v2838_v12 = vadd.f32 %v2815_v20, %v1165_v51 }
 0x570   :  { %2167 = vrsqrt.f32 %v881_v1 }
 0x574   :  { %v2162_v19 = vpop.eup %2161 }
 0x575   :  { %v886_v63 = vmul.f32 %v2162_v19, %v2680_v56 }
 0x576   :  { %v2164_v38 = vpop.eup %2163 }
 0x577   :  { %v894_v0 = vmul.f32 %v893_v2, %v886_v63  ;;  %v887_v56 = vmul.f32 %v2164_v38, %v2682_v13  ;;  %v2832_v13 = vrot.slane %v2811_v36, %v3217_v50 }
 0x578   :  { %v2166_v40 = vpop.eup %2165 }
 0x579   :  { %v2827_v1 = vadd.f32 %v901_v35, %v894_v0  ;;  %v895_v47 = vmul.f32 %v893_v2, %v887_v56  ;;  %v888_v46 = vmul.f32 %v2166_v40, %v2686_v62  ;;  %v2845_v62 = vrot.slane %v1146_v39, 5 }
 0x57a   :  { %v2168_v7 = vpop.eup %2167 }
 0x57b   :  { %v2842_v23 = vadd.f32 %v901_v35, %v895_v47  ;;  %v896_v45 = vmul.f32 %v893_v2, %v888_v46  ;;  %v889_v57 = vmul.f32 %v2168_v7, %v2691_v54  ;;  %v931_v50 = vmul.f32 %v2822_v33, %v2827_v1 }
 0x57c   :  { %v938_v19 = vmul.f32 %v2739_v37, %v2827_v1  ;;  %v945_v63 = vmul.f32 %v2713_v55, %v2827_v1  ;;  %v985_v38 = vmul.f32 %v2720_v27, %v2827_v1  ;;  %v978_v41 = vmul.f32 %v2750_v43, %v2827_v1 }
 0x57d   :  { %v2855_v52 = vadd.f32 %v901_v35, %v896_v45  ;;  %v897_v51 = vmul.f32 %v893_v2, %v889_v57  ;;  %v932_v54 = vmul.f32 %v2822_v33, %v2842_v23  ;;  %v939_v0 = vmul.f32 %v2739_v37, %v2842_v23 }
 0x57e   :  { %v946_v56 = vmul.f32 %v2713_v55, %v2842_v23  ;;  %v951_v39 = vrot.slane %v945_v63, 7  ;;  %v986_v40 = vmul.f32 %v2720_v27, %v2842_v23  ;;  %v979_v2 = vmul.f32 %v2750_v43, %v2842_v23 }
 0x57f   :  { %v2867_v47 = vadd.f32 %v901_v35, %v897_v51  ;;  %v991_v46 = vrot.slane %v985_v38, 7  ;;  %v1018_v7 = vmul.f32 %v2754_v17, %v2827_v1  ;;  %v1025_v63 = vmul.f32 %v2724_v5, %v2827_v1 }
 0x580   :  { %v952_v45 = vsel %vm69_vm0, %v2746_v21, %v951_v39  ;;  %v953_v57 = vrot.slane %v946_v56, 7  ;;  %v993_v14 = vrot.slane %v986_v40, 7  ;;  %v1019_v51 = vmul.f32 %v2754_v17, %v2842_v23 }
 0x581   :  { %v959_v44 = vadd.f32 %v952_v45, %v938_v19  ;;  %v992_v35 = vsel %vm69_vm0, %v2763_v18, %v991_v46  ;;  %v1026_v38 = vmul.f32 %v2724_v5, %v2842_v23  ;;  %v1031_v56 = vrot.slane %v1025_v63, 7 }
 0x582   :  { %v954_v16 = vsel %vm69_vm0, %v951_v39, %v953_v57  ;;  %v994_v22 = vsel %vm69_vm0, %v991_v46, %v993_v14  ;;  %v999_v3 = vadd.f32 %v992_v35, %v978_v41  ;;  %v1059_v9 = vmul.f32 %v2735_v6, %v2842_v23 }
 0x583   :  { %v960_v40 = vadd.f32 %v954_v16, %v939_v0  ;;  %v965_v30 = vrot.slane %v959_v44, 7  ;;  %v1000_v60 = vadd.f32 %v994_v22, %v979_v2  ;;  %v1033_v10 = vrot.slane %v1026_v38, 7 }
 0x584   :  { %v1005_v19 = vrot.slane %v999_v3, 5  ;;  %v1032_v45 = vsel %vm69_vm0, %v2767_v32, %v1031_v56  ;;  %v1065_v36 = vmul.f32 %v2728_v28, %v2827_v1  ;;  %v3221_v39 = vrot.slane %v2791_v58, 7 }
 0x585   :  { %v967_v41 = vrot.slane %v960_v40, 7  ;;  %v1007_v46 = vrot.slane %v1000_v60, 5  ;;  %v1034_v16 = vsel %vm69_vm0, %v1031_v56, %v1033_v10  ;;  %v1039_v44 = vadd.f32 %v1032_v45, %v1018_v7 }
 0x586   :  { %v966_v14 = vsel %vm69_vm0, %v3221_v39, %v965_v30  ;;  %v1040_v3 = vadd.f32 %v1034_v16, %v1019_v51  ;;  %v1058_v0 = vmul.f32 %v2735_v6, %v2827_v1  ;;  %v3222_v57 = vrot.slane %v2794_v49, 5 }
 0x587   :  { %v971_v22 = vadd.f32 %v966_v14, %v931_v50  ;;  %v968_v2 = vsel %vm69_vm0, %v965_v30, %v967_v41  ;;  %v1008_v35 = vsel %vm124_vm1, %v1005_v19, %v1007_v46  ;;  %v1069_v38 = vrot.slane %v1065_v36, 7 }
 0x588   :  { %v1006_v63 = vsel %vm124_vm1, %v3222_v57, %v1005_v19  ;;  %v972_v39 = vadd.f32 %v968_v2, %v932_v54  ;;  %v1045_v60 = vrot.slane %v1039_v44, 3  ;;  %v1047_v8 = vrot.slane %v1040_v3, 3 }
 0x589   :  { %v1011_v40 = vadd.f32 %v1006_v63, %v971_v22  ;;  %v1070_v10 = vsel %vm69_vm0, %v2773_v48, %v1069_v38  ;;  %v1076_v50 = vadd.f32 %v1069_v38, %v1059_v9  ;;  %v1094_v7 = vmul.f32 %v2770_v42, %v2827_v1 }
 0x58a   :  { %v1100_v30 = vmul.f32 %v2731_v26, %v2827_v1  ;;  %v1012_v51 = vadd.f32 %v1008_v35, %v972_v39  ;;  %v3223_v56 = vrot.slane %v2797_v29, 3  ;;  %v1048_v36 = vsel %vm165_vm2, %v1045_v60, %v1047_v8 }
 0x58b   :  { %v1075_v54 = vadd.f32 %v1070_v10, %v1058_v0  ;;  %v1083_v14 = vrot.slane %v1076_v50, 1  ;;  %v1136_v9 = vmul.f32 %v2743_v53, %v2827_v1  ;;  %v1130_v22 = vmul.f32 %v2776_v11, %v2827_v1 }
 0x58c   :  { %v1046_v19 = vsel %vm165_vm2, %v3223_v56, %v1045_v60  ;;  %v1105_v41 = vrot.slane %v1100_v30, 7  ;;  %v1052_v46 = vadd.f32 %v1048_v36, %v1012_v51  ;;  %v1172_v44 = vmul.f32 %v2759_v61, %v2827_v1 }
 0x58d   :  { %v1051_v45 = vadd.f32 %v1046_v19, %v1011_v40  ;;  %v1081_v16 = vrot.slane %v1075_v54, 1  ;;  %v1141_v2 = vrot.slane %v1136_v9, 7  ;;  %v1166_v8 = vmul.f32 %v2800_v34, %v2827_v1 }
 0x58e   :  { %v1106_v3 = vsel %vm69_vm0, %v2779_v4, %v1105_v41  ;;  %v1202_v0 = vmul.f32 %v2783_v15, %v2827_v1  ;;  %v3224_v57 = vrot.slane %v2806_v31, 1  ;;  %v1177_v39 = vrot.slane %v1172_v44, 7 }
 0x58f   :  { %v1084_v35 = vsel %vm202_vm3, %v1081_v16, %v1083_v14  ;;  %v1112_v38 = vadd.f32 %v1106_v3, %v1094_v7  ;;  %v1142_v10 = vsel %vm69_vm0, %v2788_v25, %v1141_v2  ;;  %v2933_v19 = vrot.slane %v2838_v12, 3 }
 0x590   :  { %v1082_v63 = vsel %vm202_vm3, %v3224_v57, %v1081_v16  ;;  %v1088_v60 = vadd.f32 %v1084_v35, %v1052_v46  ;;  %v1207_v50 = vrot.slane %v1202_v0, 1  ;;  %v1148_v51 = vadd.f32 %v1142_v10, %v1130_v22 }
 0x591   :  { %v1087_v40 = vadd.f32 %v1082_v63, %v1051_v45  ;;  %v1119_v30 = vrot.slane %v1112_v38, 7  ;;  %v1178_v56 = vsel %vm69_vm0, %v2815_v20, %v1177_v39  ;;  %v1357_v7 = vmul.f32 %v2832_v13, %v2827_v1 }
 0x592   :  { %v1184_v54 = vadd.f32 %v1178_v56, %v1166_v8  ;;  %v1358_v45 = vmul.f32 %v2832_v13, %v2842_v23  ;;  %v1155_v41 = vrot.slane %v1148_v51, 5  ;;  %v1208_v9 = vsel %vm202_vm3, %v2840_v59, %v1207_v50 }
 0x593   :  { %v1123_v36 = vadd.f32 %v2835_v24, %v1087_v40  ;;  %v1120_v14 = vsel %vm69_vm0, %v2835_v24, %v1119_v30  ;;  %v1213_v12 = vmul.f32 %v2822_v33, %v2855_v52  ;;  %v1214_v44 = vmul.f32 %v2822_v33, %v2867_v47 }
 0x594   :  { %v1124_v46 = vadd.f32 %v1120_v14, %v1088_v60  ;;  %v1191_v22 = vrot.slane %v1184_v54, 3  ;;  %v1156_v3 = vsel %vm124_vm1, %v2845_v62, %v1155_v41  ;;  %v1215_v2 = vmul.f32 %v2739_v37, %v2855_v52 }
 0x595   :  { %v1159_v16 = vadd.f32 %v2845_v62, %v1123_v36  ;;  %v1217_v8 = vmul.f32 %v2713_v55, %v2855_v52  ;;  %v1218_v0 = vmul.f32 %v2713_v55, %v2867_v47  ;;  %v1216_v33 = vmul.f32 %v2739_v37, %v2867_v47 }
 0x596   :  { %v1160_v57 = vadd.f32 %v1156_v3, %v1124_v46  ;;  %v1192_v63 = vsel %vm165_vm2, %v2933_v19, %v1191_v22  ;;  %v1241_v40 = vmul.f32 %v2720_v27, %v2855_v52  ;;  %v1242_v60 = vmul.f32 %v2720_v27, %v2867_v47 }
 0x597   :  { %v1195_v35 = vadd.f32 %v2933_v19, %v1159_v16  ;;  %v1221_v38 = vrot.slane %v1217_v8, 7  ;;  %v1223_v39 = vrot.slane %v1218_v0, 7  ;;  %v1239_v50 = vmul.f32 %v2750_v43, %v2855_v52 }
 0x598   :  { %v1196_v10 = vadd.f32 %v1192_v63, %v1160_v57  ;;  %v1240_v30 = vmul.f32 %v2750_v43, %v2867_v47  ;;  %v1245_v56 = vrot.slane %v1241_v40, 7  ;;  %v1247_v36 = vrot.slane %v1242_v60, 7 }
 0x599   :  { %v1211_v55 = vadd.f32 %v2840_v59, %v1195_v35  ;;  %v1222_v37 = vsel %vm69_vm0, %v2746_v21, %v1221_v38  ;;  %v1224_v51 = vsel %vm69_vm0, %v1221_v38, %v1223_v39  ;;  %v1265_v43 = vmul.f32 %v2724_v5, %v2855_v52 }
 0x59a   :  { %v1212_v54 = vadd.f32 %v1208_v9, %v1196_v10  ;;  %v1227_v27 = vadd.f32 %v1222_v37, %v1215_v2  ;;  %v1228_v41 = vadd.f32 %v1224_v51, %v1216_v33  ;;  %v1246_v46 = vsel %vm69_vm0, %v2763_v18, %v1245_v56 }
 0x59b   :  { %v2974_v14 = vadd.f32 %v1357_v7, %v1211_v55  ;;  %v1248_v16 = vsel %vm69_vm0, %v1245_v56, %v1247_v36  ;;  %v1266_v21 = vmul.f32 %v2724_v5, %v2867_v47  ;;  %v1251_v2 = vadd.f32 %v1246_v46, %v1239_v50 }
 0x59c   :  { %v2983_v22 = vadd.f32 %v1358_v45, %v1212_v54  ;;  %v1231_v7 = vrot.slane %v1227_v27, 7  ;;  %v1233_v3 = vrot.slane %v1228_v41, 7  ;;  %v1252_v8 = vadd.f32 %v1248_v16, %v1240_v30 }
 0x59d   :  { %v1365_v9 = vmul.f32 %v2974_v14, %v2974_v14  ;;  %v1269_v0 = vrot.slane %v1265_v43, 7  ;;  %v1271_v57 = vrot.slane %v1266_v21, 7  ;;  %v3225_v35 = vrot.slane %v2791_v58, 7 }
 0x59e   :  { %v1366_v18 = vmul.f32 %v2983_v22, %v2983_v22  ;;  %v1234_v45 = vsel %vm69_vm0, %v1231_v7, %v1233_v3  ;;  %v1255_v33 = vrot.slane %v1251_v2, 5  ;;  %v1257_v38 = vrot.slane %v1252_v8, 5 }
 0x59f   :  { %v1369_v63 = vmul.f32 %v1365_v9, %v2974_v14  ;;  %v1232_v5 = vsel %vm69_vm0, %v3225_v35, %v1231_v7  ;;  %v1263_v39 = vmul.f32 %v2754_v17, %v2855_v52  ;;  %v1264_v40 = vmul.f32 %v2754_v17, %v2867_v47 }
 0x5a0   :  { %v1370_v60 = vmul.f32 %v1366_v18, %v2983_v22  ;;  %v1270_v55 = vsel %vm69_vm0, %v2767_v32, %v1269_v0  ;;  %v1272_v58 = vsel %vm69_vm0, %v1269_v0, %v1271_v57  ;;  %v1237_v50 = vadd.f32 %v1232_v5, %v1213_v12 }
 0x5a1   :  { %v1373_v10 = vmul.f32 0.044715, %v1369_v63  ;;  %v1238_v30 = vadd.f32 %v1234_v45, %v1214_v44  ;;  %v1275_v37 = vadd.f32 %v1270_v55, %v1263_v39  ;;  %v1276_v51 = vadd.f32 %v1272_v58, %v1264_v40 }
 0x5a2   :  { %v1374_v56 = vmul.f32 0.044715, %v1370_v60  ;;  %v3226_v54 = vrot.slane %v2794_v49, 5  ;;  %v1258_v17 = vsel %vm124_vm1, %v1255_v33, %v1257_v38  ;;  %v1289_v12 = vmul.f32 %v2728_v28, %v2855_v52 }
 0x5a3   :  { %v1377_v36 = vadd.f32 %v1373_v10, %v2974_v14  ;;  %v1279_v41 = vrot.slane %v1275_v37, 3  ;;  %v1281_v32 = vrot.slane %v1276_v51, 3  ;;  %v1262_v43 = vadd.f32 %v1258_v17, %v1238_v30 }
 0x5a4   :  { %v1256_v27 = vsel %vm124_vm1, %v3226_v54, %v1255_v33  ;;  %v1378_v46 = vadd.f32 %v1374_v56, %v2983_v22  ;;  %v1288_v21 = vmul.f32 %v2735_v6, %v2867_v47  ;;  %v1308_v49 = vmul.f32 %v2731_v26, %v2855_v52 }
 0x5a5   :  { %v1381_v16 = vmul.f32 0.7978846, %v1377_v36  ;;  %v1261_v44 = vadd.f32 %v1256_v27, %v1237_v50  ;;  %v1287_v7 = vmul.f32 %v2735_v6, %v2855_v52  ;;  %v1307_v3 = vmul.f32 %v2770_v42, %v2855_v52 }
 0x5a6   :  { %v1382_v9 = vmul.f32 0.7978846, %v1378_v46  ;;  %v3227_v2 = vrot.slane %v2797_v29, 3  ;;  %v1291_v8 = vrot.slane %v1289_v12, 7  ;;  %v1310_v0 = vrot.slane %v1308_v49, 7 }
 0x5a7   :  { %2169 = vtanh.f32 %v1381_v16  ;;  %v1321_v57 = vmul.f32 %v2743_v53, %v2855_v52  ;;  %v1282_v26 = vsel %vm165_vm2, %v1279_v41, %v1281_v32  ;;  %v1320_v18 = vmul.f32 %v2776_v11, %v2855_v52 }
 0x5a8   :  { %v1280_v28 = vsel %vm165_vm2, %v3227_v2, %v1279_v41  ;;  %2171 = vtanh.f32 %v1382_v9  ;;  %v1334_v6 = vmul.f32 %v2759_v61, %v2855_v52  ;;  %v1292_v42 = vsel %vm69_vm0, %v2773_v48, %v1291_v8 }
 0x5a9   :  { %v1296_v29 = vadd.f32 %v1291_v8, %v1288_v21  ;;  %v1311_v63 = vsel %vm69_vm0, %v2779_v4, %v1310_v0  ;;  %v1323_v35 = vrot.slane %v1321_v57, 7  ;;  %v1285_v5 = vadd.f32 %v1280_v28, %v1261_v44 }
 0x5aa   :  { %v1295_v45 = vadd.f32 %v1292_v42, %v1287_v7  ;;  %v1313_v53 = vadd.f32 %v1311_v63, %v1307_v3  ;;  %v1336_v33 = vrot.slane %v1334_v6, 7  ;;  %v1286_v38 = vadd.f32 %v1282_v26, %v1262_v43 }
 0x5ab   :  { %v1301_v39 = vrot.slane %v1296_v29, 1  ;;  %v1324_v11 = vsel %vm69_vm0, %v2788_v25, %v1323_v35  ;;  %v1333_v61 = vmul.f32 %v2800_v34, %v2855_v52  ;;  %v3228_v55 = vrot.slane %v2806_v31, 1 }
 0x5ac   :  { %v1299_v40 = vrot.slane %v1295_v45, 1  ;;  %v1315_v60 = vrot.slane %v1313_v53, 7  ;;  %v1326_v48 = vadd.f32 %v1324_v11, %v1320_v18  ;;  %v1337_v10 = vsel %vm69_vm0, %v2815_v20, %v1336_v33  ;;  %v3229_v11 = vld [vmem:[#allocation6_spill] sm:$0xff] }
 0x5ad   :  { %v1339_v4 = vadd.f32 %v1337_v10, %v1333_v61  ;;  %v1346_v25 = vmul.f32 %v2783_v15, %v2855_v52  ;;  %v1359_v49 = vmul.f32 %v2832_v13, %v2855_v52  ;;  %v1360_v9 = vmul.f32 %v2832_v13, %v2867_v47  ;;  %v3230_v61 = vld [vmem:[#allocation5_spill] sm:$0xff] }
 0x5ae   :  { %v1300_v58 = vsel %vm202_vm3, %v3228_v55, %v1299_v40  ;;  %v1302_v50 = vsel %vm202_vm3, %v1299_v40, %v1301_v39  ;;  %v1328_v30 = vrot.slane %v1326_v48, 5  ;;  %v1316_v56 = vsel %vm69_vm0, %v2835_v24, %v1315_v60 }
 0x5af   :  { %v1305_v37 = vadd.f32 %v1300_v58, %v1285_v5  ;;  %v1306_v51 = vadd.f32 %v1302_v50, %v1286_v38  ;;  %v1341_v36 = vrot.slane %v1339_v4, 3  ;;  %v1348_v41 = vrot.slane %v1346_v25, 1 }
 0x5b0   :  { %v1329_v17 = vsel %vm124_vm1, %v2845_v62, %v1328_v30  ;;  %v1406_v40 = vrot.slane %v3230_v61, %v3229_v11 }
 0x5b1   :  { %v2170_v34 = vpop.eup %2169  ;;  %v1318_v20 = vadd.f32 %v1305_v37, %v2835_v24  ;;  %v1319_v27 = vadd.f32 %v1316_v56, %v1306_v51  ;;  %v1342_v12 = vsel %vm165_vm2, %v2933_v19, %v1341_v36  ;;  %v1349_v24 = vsel %vm202_vm3, %v2840_v59, %v1348_v41 }
 0x5b2   :  { %v1389_v54 = vadd.f32 1.0, %v2170_v34  ;;  %v2172_v31 = vpop.eup %2171 }
 0x5b3   :  { %v1390_v46 = vadd.f32 1.0, %v2172_v31  ;;  %v1331_v15 = vadd.f32 %v1318_v20, %v2845_v62  ;;  %v1332_v32 = vadd.f32 %v1329_v17, %v1319_v27 }
 0x5b4   :  { %v1393_v16 = vmul.f32 0.5, %v1389_v54 }
 0x5b5   :  { %v1394_v44 = vmul.f32 0.5, %v1390_v46  ;;  %v1344_v43 = vadd.f32 %v1331_v15, %v2933_v19  ;;  %v1345_v21 = vadd.f32 %v1342_v12, %v1332_v32 }
 0x5b6   :  { %v1397_v7 = vmul.f32 %v1393_v16, %v2974_v14 }
 0x5b7   :  { %v1398_v62 = vmul.f32 %v1394_v44, %v2983_v22  ;;  %v1351_v3 = vadd.f32 %v1344_v43, %v2840_v59  ;;  %v1352_v2 = vadd.f32 %v1349_v24, %v1345_v21 }
 0x5b9   :  { %v1401_v28 = vpack.c.bf16 %v1398_v62, %v1397_v7  ;;  %v1363_v8 = vadd.f32 %v1359_v49, %v1351_v3  ;;  %v1364_v19 = vadd.f32 %v1360_v9, %v1352_v2  ;;  %v2133_v62 = vld [vmem:[%s3177_s2 + $0x10] sm:$0xff]   ;;  %v2134_v3 = vld [vmem:[%s3177_s2 + $0x18] sm:$0xff]   ;;  %v2135_v2 = vld [vmem:[%s3176_s1 + $0x40] sm:$0xff]  }
 0x5ba   :  { %2080 = vmatprep.subr.bf16.mxu1 %v2133_v62  ;;  %2088 = vmatprep.subr.bf16.mxu0 %v2135_v2 }
 0x5bb   :  { %2076 = vmatprep.mubr.msk.bf16.mxu1 %vm542_vm4, %v1401_v28  ;;  %v1367_v0 = vmul.f32 %v1363_v8, %v1363_v8  ;;  %v1368_v57 = vmul.f32 %v1364_v19, %v1364_v19  ;;  %v2136_v28 = vld [vmem:[%s3176_s1 + $0x48] sm:$0xff]   ;;  %2089 = vmatpush3.bf16.msra.mxu0 %v2135_v2 }
 0x5bc   :  { %2090 = vmatprep.subr.bf16.mxu0 %v2136_v28 }
 0x5bd   :  { %v1371_v26 = vmul.f32 %v1367_v0, %v1363_v8  ;;  %v1372_v18 = vmul.f32 %v1368_v57, %v1364_v19 }
 0x5bf   :  { %v1375_v6 = vmul.f32 0.044715, %v1371_v26  ;;  %v1376_v42 = vmul.f32 0.044715, %v1372_v18  ;;  %2091 = vmatpush3.bf16.msra.mxu0 %v2136_v28 }
 0x5c1   :  { %v1379_v29 = vadd.f32 %v1375_v6, %v1363_v8  ;;  %v1380_v13 = vadd.f32 %v1376_v42, %v1364_v19 }
 0x5c3   :  { %v1383_v63 = vmul.f32 0.7978846, %v1379_v29  ;;  %v1384_v14 = vmul.f32 0.7978846, %v1380_v13 }
 0x5c5   :  { %2173 = vtanh.f32 %v1383_v63 }
 0x5c6   :  { %2175 = vtanh.f32 %v1384_v14 }
 0x5cf   :  { %v2174_v22 = vpop.eup %2173 }
 0x5d0   :  { %v2176_v59 = vpop.eup %2175  ;;  %v1391_v35 = vadd.f32 1.0, %v2174_v22  ;;  %v3231_v22 = vld [vmem:[#allocation7_spill] sm:$0xff] }
 0x5d1   :  { %v1392_v5 = vadd.f32 1.0, %v2176_v59  ;;  %v1533_v59 = vrot.slane %v3230_v61, %v3231_v22 }
 0x5d2   :  { %v1395_v45 = vmul.f32 0.5, %v1391_v35 }
 0x5d3   :  { %v1396_v53 = vmul.f32 0.5, %v1392_v5 }
 0x5d4   :  { %v1399_v33 = vmul.f32 %v1395_v45, %v1363_v8 }
 0x5d5   :  { %v1400_v38 = vmul.f32 %v1396_v53, %v1364_v19 }
 0x5d7   :  { %v1402_v39 = vpack.c.bf16 %v1400_v38, %v1399_v33  ;;  %v3232_v38 = vld [vmem:[#allocation8_spill] sm:$0xff] }
 0x5d9   :  { %2077 = vmatmul.mubr.msk.bf16.vlgmr.msra.gmra.mrb[4].mxu1 %vm542_vm4, %v1402_v39  ;;  %v1541_v39 = vrot.slane %v3230_v61, %v3232_v38 }
 0x5da   :  { %2081 = vmatpush3.bf16.msra.mxu1 %v2133_v62 }
 0x5db   :  { %2082 = vmatprep.subr.bf16.mxu1 %v2134_v3 }
 0x5de   :  { %2083 = vmatpush3.bf16.msra.mxu1 %v2134_v3 }
 0x6ac   :  { %v2078_v60 = vpop.f32.mrb[4].mxu1 }
 0x6ad   :  { %v1459_v48 = vpop.f32.mrb[5].mxu1  ;;  %v1468_v10 = vadd.f32 %v2078_v60, %v1406_v40 }
 0x6ae   :  { %v1460_v4 = vadd.f32 %v1459_v48, %v1406_v40  ;;  %v2079_v55 = vpop.f32.mrb[6].mxu1 }
 0x6af   :  { %v1462_v58 = vpop.f32.mrb[7].mxu1  ;;  %v1471_v50 = vadd.f32 %v2079_v55, %v1406_v40  ;;  %v1476_v34 = vadd.f32 %v1468_v10, %v2855_v52 }
 0x6b0   :  { %v1463_v30 = vadd.f32 %v1462_v58, %v1406_v40  ;;  %v1474_v25 = vadd.f32 %v1460_v4, %v2827_v1 }
 0x6b1   :  { %v1477_v36 = vadd.f32 %v1471_v50, %v2867_v47  ;;  %v1484_v54 = vsel %vm542_vm4, %v1476_v34, 0.0 }
 0x6b2   :  { %v1478_v37 = vsel %vm542_vm4, %v1474_v25, 0.0  ;;  %v1475_v51 = vadd.f32 %v1463_v30, %v2842_v23 }
 0x6b3   :  { %1479 = vadd.xlane.f32.xlu0 %v1478_v37  ;;  %v1487_v20 = vsel %vm542_vm4, %v1477_v36, 0.0 }
 0x6b4   :  { %v1481_v56 = vsel %vm542_vm4, %v1475_v51, 0.0 }
 0x6b5   :  { %1482 = vadd.xlane.f32.xlu1 %v1481_v56  ;;  %v2138_v56 = vld [vmem:[%s3176_s1 + $0x58] sm:$0xff]  }
 0x6b7   :  { %1485 = vadd.xlane.f32.xlu0 %v1484_v54 }
 0x6b9   :  { %1488 = vadd.xlane.f32.xlu1 %v1487_v20 }
 0x740   :  { %v1480_v27 = vpop.xlane.xlu0 %1479 }
 0x741   :  { %v1490_v1 = vmul.f32 0.03125, %v1480_v27 }
 0x742   :  { %v1483_v31 = vpop.xlane.xlu1 %1482 }
 0x743   :  { %v1494_v17 = vsub.f32 %v1474_v25, %v1490_v1  ;;  %v1491_v41 = vmul.f32 0.03125, %v1483_v31 }
 0x744   :  { %v1486_v23 = vpop.xlane.xlu0 %1485 }
 0x745   :  { %v1495_v46 = vsub.f32 %v1475_v51, %v1491_v41  ;;  %v1492_v52 = vmul.f32 0.03125, %v1486_v23  ;;  %v1498_v16 = vmul.f32 %v1494_v17, %v1494_v17 }
 0x746   :  { %v1489_v15 = vpop.xlane.xlu1 %1488 }
 0x747   :  { %v1496_v32 = vsub.f32 %v1476_v34, %v1492_v52  ;;  %v1493_v12 = vmul.f32 0.03125, %v1489_v15  ;;  %v1502_v47 = vsel %vm542_vm4, %v1498_v16, 0.0  ;;  %v1499_v44 = vmul.f32 %v1495_v46, %v1495_v46  ;;  %v2137_v34 = vld [vmem:[%s3176_s1 + $0x50] sm:$0xff]  }
 0x748   :  { %1503 = vadd.xlane.f32.xlu0 %v1502_v47  ;;  %2092 = vmatprep.subr.bf16.mxu0 %v2137_v34  ;;  %v3233_v47 = vld [vmem:[#allocation9_spill] sm:$0xff] }
 0x749   :  { %v1497_v43 = vsub.f32 %v1477_v36, %v1493_v12  ;;  %v1505_v21 = vsel %vm542_vm4, %v1499_v44, 0.0  ;;  %v1500_v24 = vmul.f32 %v1496_v32, %v1496_v32  ;;  %2093 = vmatpush3.bf16.msra.mxu0 %v2137_v34  ;;  %v1987_v36 = vld [vmem:[%s3179_s4 + $0x1] ss:$0 sm:$0xff]  ;;  %v1628_v44 = vrot.slane %v3230_v61, %v3233_v47 }
 0x74a   :  { %1506 = vadd.xlane.f32.xlu1 %v1505_v21  ;;  %2094 = vmatprep.subr.bf16.mxu0 %v2138_v56 }
 0x74b   :  { %v1508_v49 = vsel %vm542_vm4, %v1500_v24, 0.0  ;;  %v1501_v9 = vmul.f32 %v1497_v43, %v1497_v43 }
 0x74c   :  { %1509 = vadd.xlane.f32.xlu0 %v1508_v49 }
 0x74d   :  { %v1511_v7 = vsel %vm542_vm4, %v1501_v9, 0.0  ;;  %2095 = vmatpush3.bf16.msra.mxu0 %v2138_v56 }
 0x74e   :  { %1512 = vadd.xlane.f32.xlu1 %v1511_v7 }
 0x7d5   :  { %v1504_v8 = vpop.xlane.xlu0 %1503 }
 0x7d6   :  { %v1514_v19 = vmul.f32 0.03125, %v1504_v8 }
 0x7d7   :  { %v1507_v0 = vpop.xlane.xlu1 %1506 }
 0x7d8   :  { %v1518_v57 = vadd.f32 1e-05, %v1514_v19  ;;  %v1515_v26 = vmul.f32 0.03125, %v1507_v0 }
 0x7d9   :  { %v1510_v18 = vpop.xlane.xlu0 %1509 }
 0x7da   :  { %2177 = vrsqrt.f32 %v1518_v57  ;;  %v1519_v6 = vadd.f32 1e-05, %v1515_v26  ;;  %v1516_v42 = vmul.f32 0.03125, %v1510_v18 }
 0x7db   :  { %v1513_v29 = vpop.xlane.xlu1 %1512 }
 0x7dc   :  { %2179 = vrsqrt.f32 %v1519_v6  ;;  %v1520_v13 = vadd.f32 1e-05, %v1516_v42  ;;  %v1517_v63 = vmul.f32 0.03125, %v1513_v29 }
 0x7de   :  { %2181 = vrsqrt.f32 %v1520_v13  ;;  %v1521_v14 = vadd.f32 1e-05, %v1517_v63 }
 0x7e0   :  { %2183 = vrsqrt.f32 %v1521_v14 }
 0x7e4   :  { %v2178_v35 = vpop.eup %2177 }
 0x7e5   :  { %v1526_v5 = vmul.f32 %v2178_v35, %v1494_v17 }
 0x7e6   :  { %v2180_v45 = vpop.eup %2179 }
 0x7e7   :  { %v1527_v53 = vmul.f32 %v2180_v45, %v1495_v46  ;;  %v1534_v33 = vmul.f32 %v1533_v59, %v1526_v5 }
 0x7e8   :  { %v2182_v11 = vpop.eup %2181 }
 0x7e9   :  { %v1528_v40 = vmul.f32 %v2182_v11, %v1496_v32  ;;  %v1535_v60 = vmul.f32 %v1533_v59, %v1527_v53  ;;  %v1542_v55 = vadd.f32 %v1541_v39, %v1534_v33 }
 0x7ea   :  { %v2184_v48 = vpop.eup %2183 }
 0x7eb   :  { %v1536_v10 = vmul.f32 %v1533_v59, %v1528_v40  ;;  %v1529_v4 = vmul.f32 %v2184_v48, %v1497_v43  ;;  %v1543_v58 = vadd.f32 %v1541_v39, %v1535_v60 }
 0x7ed   :  { %v1537_v50 = vmul.f32 %v1533_v59, %v1529_v4  ;;  %v1546_v30 = vpack.c.bf16 %v1543_v58, %v1542_v55  ;;  %v1544_v25 = vadd.f32 %v1541_v39, %v1536_v10  ;;  %v2139_v4 = vld [vmem:[%s3177_s2 + $0x20] sm:$0xff]  }
 0x7ef   :  { %2084 = vmatprep.mubr.msk.bf16.mxu1 %vm542_vm4, %v1546_v30  ;;  %v1545_v37 = vadd.f32 %v1541_v39, %v1537_v50 }
 0x7f1   :  { %v1547_v51 = vpack.c.bf16 %v1545_v37, %v1544_v25 }
 0x7f3   :  { %2085 = vmatmul.mubr.msk.bf16.vlgmr.msra.gmra.mrb[8].mxu1 %vm542_vm4, %v1547_v51 }
 0x8c6   :  { %v2086_v54 = vpop.f32.mrb[8].mxu1 }
 0x8c7   :  { %v1613_v20 = vadd.f32 %v2086_v54, %v1987_v36  ;;  %v1604_v27 = vpop.f32.mrb[9].mxu1 }
 0x8c8   :  { %v1605_v1 = vadd.f32 %v1987_v36, %v1604_v27  ;;  %v2087_v31 = vpop.f32.mrb[10].mxu1 }
 0x8c9   :  { %v1616_v17 = vadd.f32 %v2087_v31, %v1987_v36  ;;  %v1607_v41 = vpop.f32.mrb[11].mxu1  ;;  %v1621_v46 = vmax.f32 %v1613_v20, 0.0  ;;  %v3234_v31 = vld [vmem:[#allocation10_spill] sm:$0xff] }
 0x8ca   :  { %v1608_v23 = vadd.f32 %v1987_v36, %v1607_v41  ;;  %v1619_v16 = vmax.f32 %v1605_v1, 0.0 }
 0x8cb   :  { %v1622_v52 = vmax.f32 %v1616_v17, 0.0  ;;  %v1767_v17 = vrot.slane %v3230_v61, %v3234_v31 }
 0x8cc   :  { %v1620_v15 = vmax.f32 %v1608_v23, 0.0  ;;  %v3235_v23 = vld [vmem:[#allocation11_spill] sm:$0xff] }
 0x8cd   :  { %v1624_v32 = vpack.c.bf16 %v1622_v52, %v1621_v46  ;;  %v1775_v46 = vrot.slane %v3230_v61, %v3235_v23 }
 0x8ce   :  { %v1623_v12 = vpack.c.bf16 %v1620_v15, %v1619_v16 }
 0x8d0   :  { %2096 = vmatprep.mubr.msk.bf16.mxu0 %vm778_vm5, %v1623_v12 }
 0x8d1   :  { %2097 = vmatmul.mubr.msk.bf16.vlgmr.msra.gmra.mrb[8].mxu0 %vm778_vm5, %v1624_v32 }
 0x9a4   :  { %v2098_v43 = vpop.f32.mrb[8].mxu0 }
 0x9a5   :  { %v1693_v21 = vpop.f32.mrb[9].mxu0  ;;  %v1702_v24 = vadd.f32 %v2098_v43, %v1628_v44 }
 0x9a6   :  { %v1694_v49 = vadd.f32 %v1693_v21, %v1628_v44  ;;  %v2099_v9 = vpop.f32.mrb[10].mxu0 }
 0x9a7   :  { %v1696_v7 = vpop.f32.mrb[11].mxu0  ;;  %v1705_v62 = vadd.f32 %v2099_v9, %v1628_v44  ;;  %v1710_v19 = vadd.f32 %v1702_v24, %v1544_v25 }
 0x9a8   :  { %v1697_v3 = vadd.f32 %v1696_v7, %v1628_v44  ;;  %v1708_v2 = vadd.f32 %v1694_v49, %v1542_v55  ;;  %v2217_v55 = vmov 0.0  }
 0x9a9   :  { %v1711_v57 = vadd.f32 %v1705_v62, %v1545_v37  ;;  %v1718_v26 = vsel %vm542_vm4, %v1710_v19, 0.0  ;;  %2100 = vmatprep.subr.bf16.mxu1 %v2217_v55  ;;  %2104 = vmatprep.mubr.msk.bf16.mxu1 %vm2218_vm6, %v2217_v55 }
 0x9aa   :  { %v1712_v28 = vsel %vm542_vm4, %v1708_v2, 0.0  ;;  %v1709_v8 = vadd.f32 %v1697_v3, %v1543_v58  ;;  %2101 = vmatpush3.bf16.msra.mxu1 %v2139_v4  ;;  %v2140_v58 = vld [vmem:[%s3177_s2 + $0x28] sm:$0xff]  }
 0x9ab   :  { %1713 = vadd.xlane.f32.xlu0 %v1712_v28  ;;  %v1721_v18 = vsel %vm542_vm4, %v1711_v57, 0.0  ;;  %2102 = vmatprep.subr.bf16.mxu1 %v2217_v55 }
 0x9ac   :  { %v1715_v0 = vsel %vm542_vm4, %v1709_v8, 0.0 }
 0x9ad   :  { %1716 = vadd.xlane.f32.xlu1 %v1715_v0 }
 0x9ae   :  { %2103 = vmatpush3.bf16.msra.mxu1 %v2140_v58 }
 0x9af   :  { %1719 = vadd.xlane.f32.xlu0 %v1718_v26  ;;  %2108 = vmatprep.subr.bf16.mxu1 %v2217_v55 }
 0x9b1   :  { %1722 = vadd.xlane.f32.xlu1 %v1721_v18 }
 0xa38   :  { %v1714_v6 = vpop.xlane.xlu0 %1713 }
 0xa39   :  { %v1724_v42 = vmul.f32 0.03125, %v1714_v6 }
 0xa3a   :  { %v1717_v29 = vpop.xlane.xlu1 %1716 }
 0xa3b   :  { %v1728_v13 = vsub.f32 %v1708_v2, %v1724_v42  ;;  %v1725_v63 = vmul.f32 0.03125, %v1717_v29 }
 0xa3c   :  { %v1720_v14 = vpop.xlane.xlu0 %1719 }
 0xa3d   :  { %v1729_v22 = vsub.f32 %v1709_v8, %v1725_v63  ;;  %v1726_v59 = vmul.f32 0.03125, %v1720_v14  ;;  %v1732_v35 = vmul.f32 %v1728_v13, %v1728_v13 }
 0xa3e   :  { %v1723_v5 = vpop.xlane.xlu1 %1722 }
 0xa3f   :  { %v1730_v45 = vsub.f32 %v1710_v19, %v1726_v59  ;;  %v1727_v53 = vmul.f32 0.03125, %v1723_v5  ;;  %v1736_v33 = vsel %vm542_vm4, %v1732_v35, 0.0  ;;  %v1733_v38 = vmul.f32 %v1729_v22, %v1729_v22 }
 0xa40   :  { %1737 = vadd.xlane.f32.xlu0 %v1736_v33  ;;  %v2141_v33 = vld [vmem:[%s3177_s2 + $0x30] sm:$0xff]  }
 0xa41   :  { %v1731_v39 = vsub.f32 %v1711_v57, %v1727_v53  ;;  %v1739_v11 = vsel %vm542_vm4, %v1733_v38, 0.0  ;;  %v1734_v40 = vmul.f32 %v1730_v45, %v1730_v45 }
 0xa42   :  { %1740 = vadd.xlane.f32.xlu1 %v1739_v11  ;;  %v2143_v11 = vld [vmem:[%s3177_s2 + $0x40] sm:$0xff]  }
 0xa43   :  { %v1742_v60 = vsel %vm542_vm4, %v1734_v40, 0.0  ;;  %v1735_v48 = vmul.f32 %v1731_v39, %v1731_v39  ;;  %v2144_v40 = vld [vmem:[%s3177_s2 + $0x48] sm:$0xff]  }
 0xa44   :  { %1743 = vadd.xlane.f32.xlu0 %v1742_v60  ;;  %v1998_v60 = vld [vmem:[%s3179_s4 + $0x2] ss:$0 sm:$0xff] }
 0xa45   :  { %v1745_v10 = vsel %vm542_vm4, %v1735_v48, 0.0 }
 0xa46   :  { %1746 = vadd.xlane.f32.xlu1 %v1745_v10 }
 0xacd   :  { %v1738_v50 = vpop.xlane.xlu0 %1737 }
 0xace   :  { %v1748_v30 = vmul.f32 0.03125, %v1738_v50 }
 0xacf   :  { %v1741_v25 = vpop.xlane.xlu1 %1740 }
 0xad0   :  { %v1752_v37 = vadd.f32 1e-05, %v1748_v30  ;;  %v1749_v51 = vmul.f32 0.03125, %v1741_v25 }
 0xad1   :  { %v1744_v34 = vpop.xlane.xlu0 %1743 }
 0xad2   :  { %2185 = vrsqrt.f32 %v1752_v37  ;;  %v1753_v56 = vadd.f32 1e-05, %v1749_v51  ;;  %v1750_v36 = vmul.f32 0.03125, %v1744_v34  ;;  %v2002_v37 = vld [vmem:[%s3179_s4 + $0x3] ss:$0 sm:$0xff] }
 0xad3   :  { %v1747_v54 = vpop.xlane.xlu1 %1746 }
 0xad4   :  { %2187 = vrsqrt.f32 %v1753_v56  ;;  %v1754_v20 = vadd.f32 1e-05, %v1750_v36  ;;  %v1751_v27 = vmul.f32 0.03125, %v1747_v54 }
 0xad6   :  { %2189 = vrsqrt.f32 %v1754_v20  ;;  %v1755_v1 = vadd.f32 1e-05, %v1751_v27 }
 0xad8   :  { %2191 = vrsqrt.f32 %v1755_v1 }
 0xadc   :  { %v2186_v41 = vpop.eup %2185 }
 0xadd   :  { %v1760_v52 = vmul.f32 %v2186_v41, %v1728_v13 }
 0xade   :  { %v2188_v16 = vpop.eup %2187 }
 0xadf   :  { %v1768_v15 = vmul.f32 %v1767_v17, %v1760_v52  ;;  %v1761_v32 = vmul.f32 %v2188_v16, %v1729_v22 }
 0xae0   :  { %v2190_v12 = vpop.eup %2189 }
 0xae1   :  { %v1776_v47 = vadd.f32 %v1775_v46, %v1768_v15  ;;  %v1769_v44 = vmul.f32 %v1767_v17, %v1761_v32  ;;  %v1762_v43 = vmul.f32 %v2190_v12, %v1730_v45 }
 0xae2   :  { %v2192_v21 = vpop.eup %2191 }
 0xae3   :  { %v1777_v24 = vadd.f32 %v1775_v46, %v1769_v44  ;;  %v1770_v49 = vmul.f32 %v1767_v17, %v1762_v43  ;;  %v1763_v9 = vmul.f32 %v2192_v21, %v1731_v39  ;;  %v1780_v7 = vsel %vm542_vm4, %v1776_v47, 0.0  ;;  %v2142_v39 = vld [vmem:[%s3177_s2 + $0x38] sm:$0xff]   ;;  %s2219_s2 = smov [#allocation2]  }
 0xae4   :  { %s1957_s10 = sshll.u32 %s2219_s2, 4  ;;  %s1958_s10 = int_to_ptr.vmem [resolvable:$true] %s1957_s10 }
 0xae5   :  { %v1781_v62 = vsel %vm542_vm4, %v1777_v24, 0.0  ;;  %v1778_v3 = vadd.f32 %v1775_v46, %v1770_v49  ;;  %v1771_v2 = vmul.f32 %v1767_v17, %v1763_v9  ;;  %s2193_s0 = scalar_lea.vmem %s1958_s10, 32  ;;  %p2198_p1 = scmp.lt.s32.totalorder %s1958_s10, %s1958_s10 }
 0xae6   :  { %v1782_v28 = vadd.f32 %v1781_v62, %v1780_v7  ;;  %p2194_p0 = scmp.ne.s32.totalorder %s1958_s10, %s2193_s0  ;;  %p2199_p2 = scmp.lt.s32.totalorder %s2193_s0, %s2193_s0 }
 0xae7   :  { %v1779_v61 = vadd.f32 %v1775_v46, %v1771_v2  ;;  %v1791_v19 = vsel %vm542_vm4, %v1778_v3, 0.0 }
 0xae8   :  { %v1783_v8 = vrot.slane %v1782_v28, 4  ;;  %p2200_p3 = por %p2199_p2, %p2198_p1 }
 0xae9   :  { %v1792_v0 = vsel %vm542_vm4, %v1779_v61, 0.0 }
 0xaea   :  { %v1793_v57 = vadd.f32 %v1792_v0, %v1791_v19  ;;  %v1784_v26 = vadd.f32 %v1783_v8, %v1782_v28  ;;  %p2201_p4 = pnand %p2200_p3, %p2194_p0 }
 0xaec   :  { %v1794_v18 = vrot.slane %v1793_v57, 4  ;;  %v1785_v6 = vrot.slane %v1784_v26, 2 }
 0xaee   :  { %v1795_v42 = vadd.f32 %v1794_v18, %v1793_v57  ;;  %v1786_v29 = vadd.f32 %v1785_v6, %v1784_v26 }
 0xaf0   :  { %v1787_v13 = vrot.slane %v1786_v29, 1  ;;  %v1796_v63 = vrot.slane %v1795_v42, 2 }
 0xaf2   :  { %v1797_v14 = vadd.f32 %v1796_v63, %v1795_v42  ;;  %v1788_v22 = vadd.f32 %v1787_v13, %v1786_v29 }
 0xaf4   :  { %v1798_v59 = vrot.slane %v1797_v14, 1  ;;  %v1790_v5 = vmul.f32 0.0625, %v1788_v22 }
 0xaf6   :  { %v1799_v35 = vadd.f32 %v1798_v59, %v1797_v14 }
 0xaf8   :  { %v1800_v45 = vmul.f32 0.0625, %v1799_v35 }
 0xafa   :  { %v1801_v53 = vsel %vm69_vm0, %v1790_v5, %v1800_v45 }
 0xafb   :  { %v1816_v38 = vpack.c.bf16 %v1801_v53, %v1801_v53 }
 0xafd   :  { %2105 = vmatmul.mubr.msk.bf16.vlgmr.msra.gmra.mrb[12].mxu1 %vm542_vm4, %v1816_v38 }
 0xafe   :  { %2109 = vmatpush3.bf16.msra.mxu1 %v2141_v33  ;;  %2116 = vmatprep.mubr.msk.bf16.mxu1 %vm2218_vm6, %v2217_v55 }
 0xaff   :  { %2110 = vmatprep.subr.bf16.mxu1 %v2217_v55 }
 0xb02   :  { %2111 = vmatpush3.bf16.msra.mxu1 %v2142_v39 }
 0xb03   :  { %2112 = vmatprep.subr.bf16.mxu1 %v2217_v55 }
 0xb06   :  { %2113 = vmatpush3.bf16.msra.mxu1 %v2143_v11 }
 0xb07   :  { %2114 = vmatprep.subr.bf16.mxu1 %v2217_v55 }
 0xb0a   :  { %2115 = vmatpush3.bf16.msra.mxu1 %v2144_v40 }
 0xbd0   :  { %v1870_v48 = vpop.f32.mrb[12].mxu1 }
 0xbd1   :  { %v1871_v10 = vadd.f32 %v1998_v60, %v1870_v48  ;;  %v2106_v4 = vpop.f32.mrb[13].mxu1 }
 0xbd2   :  { %v1873_v58 = vpop.f32.mrb[14].mxu1 }
 0xbd3   :  { %v1876_v50 = vmax.f32 %v1871_v10, 0.0  ;;  %v2107_v30 = vpop.f32.mrb[15].mxu1 }
 0xbd5   :  { %v1877_v25 = vpack.c.bf16 %v1876_v50, %v1876_v50 }
 0xbd7   :  { %2117 = vmatmul.mubr.msk.bf16.vlgmr.msra.gmra.mrb[16].mxu1 %vm778_vm5, %v1877_v25 }
 0xcaa   :  { %v1943_v55 = vpop.f32.mrb[16].mxu1 }
 0xcab   :  { %v1944_v51 = vadd.f32 %v2002_v37, %v1943_v55  ;;  %v2118_v34 = vpop.f32.mrb[17].mxu1 }
 0xcac   :  { %v1946_v56 = vpop.f32.mrb[18].mxu1 }
 0xcad   :  { %v2119_v36 = vpop.f32.mrb[19].mxu1  ;;  %v1949_v54 = vsel %vm778_vm5, %v1944_v51, 0.0 }
 0xcae   :  { %1950 = vst [vmem:[#allocation2] sm:$0x3] %v1949_v54 }
 0xcaf   :  { %2204 = shalt.err (!%p2201_p4)
}
 0xcb0   :  { %s2205_s12 = scalar_lea.hbm %s3180_s5, 32 }
 0xcb1   :  { %p2206_p5 = scmp.ne.s32.totalorder %s3180_s5, %s2205_s12  ;;  %p2209_p6 = scmp.lt.u32.totalorder %s2205_s12, %s3180_s5 }
 0xcb3   :  { %p2211_p7 = pnand %p2209_p6, %p2206_p5 }
 0xcb5   :  { %2214 = shalt.err (!%p2211_p7)
}
 0xcb6   :  { %1960 = dma.vmem_to_hbm [thread:$0]  %s1958_s10, 32, %s3180_s5, [#allocation3]  }
 0xcb7   :  { %2215 = dma.done.wait [#allocation3], 32  }
 0xcb8   :  { %2216 = vsyncadd [#allocation3], 4294967264 }
 0xcb9   :  { %1964 = vsyncpa [#allocation3], 1 }

</bundles_post_ra>
